<compile_context>
chip_gen: v7x
topology: tpu7x:2x2x1
jax: 0.10.0
libtpu: 0.0.40
codegen_flags: <defaults>
</compile_context>

<pallas_src>
import functools
import math

import jax
import jax.numpy as jnp
from jax import lax
from jax.experimental import pallas as pl
from jax.experimental.pallas import tpu as pltpu

BF16 = jnp.bfloat16
# dot_general dims for A @ B.T (contract last dims of both operands, no batch dims)
_NT_DIMS = (((1,), (1,)), ((), ()))


def _vmem_limit_bytes():
    """Generation-aware VMEM budget with ~20% headroom for compiler scratch."""
    try:
        cap = int(pltpu.get_tpu_info().vmem_capacity_bytes)
        return max(32 * 1024 * 1024, (cap * 4) // 5)
    except Exception:
        return 64 * 1024 * 1024


# ----------------------------------------------------------------------------
# small in-kernel helpers (pure jnp, traced inside the Pallas kernels)
# ----------------------------------------------------------------------------
def _layernorm(x, w, b, eps=1e-5):
    mu = jnp.mean(x, axis=-1, keepdims=True)
    var = jnp.mean((x - mu) ** 2, axis=-1, keepdims=True)
    return (x - mu) * lax.rsqrt(var + eps) * w + b


def _erf(x):
    # Numerical-Recipes erfc rational approximation (|err| < 1.2e-7, float32-exact).
    a = jnp.abs(x)
    t = 1.0 / (1.0 + 0.5 * a)
    poly = (-1.26551223 + t * (1.00002368 + t * (0.37409196 + t * (0.09678418 +
            t * (-0.18628806 + t * (0.27886807 + t * (-1.13520398 + t * (1.48851587 +
            t * (-0.82215223 + t * 0.17087277)))))))))
    erfc = t * jnp.exp(-a * a + poly)
    erfc = jnp.where(x >= 0.0, erfc, 2.0 - erfc)
    return 1.0 - erfc


def _gelu_exact(x):
    # torch.nn.GELU() default (approximate='none'): 0.5*x*(1+erf(x/sqrt(2)))
    return 0.5 * x * (1.0 + _erf(x * (1.0 / math.sqrt(2.0))))


def _bf(x):
    return x.astype(BF16)


# ----------------------------------------------------------------------------
# Pallas kernels
# ----------------------------------------------------------------------------
def proj_in_kernel(x_ref, w_ref, b_ref, o_ref):
    # x: (row_blk, emb_dim) bf16, w: (emb_dim, dim) bf16, b: (1, dim) f32 -> bf16
    y = jnp.dot(x_ref[...], w_ref[...], preferred_element_type=jnp.float32)
    o_ref[...] = (y + b_ref[...]).astype(o_ref.dtype)


def resampler_layers_kernel(lat0_ref, x_ref, rowh_ref, colh_ref,
                            wq_ref, wkv_ref, wo_ref,
                            lnw_ref, lnb_ref, w1_ref, w2_ref,
                            o_ref, lat_acc,
                            *, B, N, L, heads, dim_head):
    # grid = (depth,).  Per step (layer d):
    #   lat0: (B*L, dim) f32        x: (B*N, dim) bf16 (proj_in output, flattened)
    #   rowh: (H*L, 1) i32          colh: (1, inner) i32     (per-head channel ids)
    #   wq: (1, dim, inner)  wkv: (1, dim, 2*inner)  wout: (1, inner, dim)  (bf16)
    #   ln_w/ln_b: (1, 1, dim) f32  ff_w1: (1, dim, ffi)  ff_w2: (1, ffi, dim) (bf16)
    #   out: (B*L, dim) bf16 (written only at the last layer)
    #   lat_acc scratch: (B*L, dim) f32 residual stream
    d = pl.program_id(0)
    inner = heads * dim_head

    @pl.when(d == 0)
    def _init():
        lat_acc[...] = lat0_ref[...]

    lat = lat_acc[...]                       # (B*L, dim) f32 residual stream
    lat_b = _bf(lat)
    x = x_ref[...]                           # (B*N, dim) bf16

    wq = wq_ref[0]                           # (dim, inner)   scale folded in
    wkv = wkv_ref[0]                         # (dim, 2*inner)

    # ---- projections on the full row stacks (good MXU M-utilisation) ----
    q_all = jnp.dot(lat_b, wq, preferred_element_type=jnp.float32)      # (B*L, inner)
    kv_x = jnp.dot(x, wkv, preferred_element_type=jnp.float32)          # (B*N, 2*inner)
    kv_l = jnp.dot(lat_b, wkv, preferred_element_type=jnp.float32)      # (B*L, 2*inner)
    k_x, v_x = _bf(kv_x[:, :inner]), _bf(kv_x[:, inner:])
    k_l, v_l = _bf(kv_l[:, :inner]), _bf(kv_l[:, inner:])

    # per-head channel mask (H*L, inner), rebuilt in-kernel from tiny id vectors
    mask = (rowh_ref[...] == colh_ref[...]).astype(jnp.float32)

    # ---- PerceiverAttention, head-batched via masked query replication ----
    attn_rows = []
    for b in range(B):                       # B is static and small per grid step
        q = q_all[b * L:(b + 1) * L, :]                      # (L, inner) f32
        k_xb = k_x[b * N:(b + 1) * N, :]
        v_xb = v_x[b * N:(b + 1) * N, :]
        k_lb = k_l[b * L:(b + 1) * L, :]
        v_lb = v_l[b * L:(b + 1) * L, :]

        # replicate q to head-major rows (sublane concat) and mask other heads'
        # channels -- no MXU replication matmul.
        qe = _bf(jnp.concatenate([q] * heads, axis=0) * mask)   # (H*L, inner)

        # logits over the two key segments (no (N+L) concat buffer)
        s_x = lax.dot_general(qe, k_xb, _NT_DIMS,
                              preferred_element_type=jnp.float32)   # (H*L, N)
        s_l = lax.dot_general(qe, k_lb, _NT_DIMS,
                              preferred_element_type=jnp.float32)   # (H*L, L)

        m = jnp.maximum(jnp.max(s_x, axis=-1, keepdims=True),
                        jnp.max(s_l, axis=-1, keepdims=True))
        p_x = jnp.exp(s_x - m)
        p_l = jnp.exp(s_l - m)
        den = (jnp.sum(p_x, axis=-1, keepdims=True) +
               jnp.sum(p_l, axis=-1, keepdims=True))

        t = (jnp.dot(_bf(p_x), v_xb, preferred_element_type=jnp.float32) +
             jnp.dot(_bf(p_l), v_lb, preferred_element_type=jnp.float32))  # (H*L, inner)
        t = (t / den) * mask

        # collapse head-major rows back to (L, inner) with VPU adds (no sel matmul)
        o_b = t[0:L, :]
        for h in range(1, heads):
            o_b = o_b + t[h * L:(h + 1) * L, :]
        attn_rows.append(o_b)

    o_heads = attn_rows[0] if B == 1 else jnp.concatenate(attn_rows, axis=0)
    attn = jnp.dot(_bf(o_heads), wo_ref[0],
                   preferred_element_type=jnp.float32)               # (B*L, dim)
    lat = lat + attn

    # ---- FeedForward: LayerNorm -> Linear -> GELU(exact) -> Linear + residual ----
    h = _layernorm(lat, lnw_ref[0], lnb_ref[0])
    h1 = jnp.dot(_bf(h), w1_ref[0], preferred_element_type=jnp.float32)   # (B*L, ffi)
    g = _gelu_exact(h1)
    h2 = jnp.dot(_bf(g), w2_ref[0], preferred_element_type=jnp.float32)   # (B*L, dim)
    lat = lat + h2

    lat_acc[...] = lat

    @pl.when(d == pl.num_programs(0) - 1)
    def _store():
        o_ref[...] = lat.astype(o_ref.dtype)


def proj_out_kernel(lat_ref, w_ref, b_ref, gw_ref, gb_ref, o_ref):
    # lat: (row_blk, dim) bf16, w: (dim, out_dim) bf16, b/gw/gb: (1, out_dim) f32
    y = jnp.dot(lat_ref[...], w_ref[...],
                preferred_element_type=jnp.float32) + b_ref[...]
    o_ref[...] = _layernorm(y, gw_ref[...], gb_ref[...])


# ----------------------------------------------------------------------------
# parameters (torch-like, f32) + host-side preparation for the kernels
# ----------------------------------------------------------------------------
def init_params(key, *, dim, depth, dim_head, heads, num_queries,
                embedding_dim, output_dim, ff_mult):
    inner = dim_head * heads
    ff_inner = int(dim * ff_mult)
    keys = list(jax.random.split(key, 8 + depth * 8))
    kit = iter(keys)

    def nrm(shape, scale):
        return jax.random.normal(next(kit), shape, jnp.float32) * scale

    p = {
        'latents':    nrm((1, num_queries, dim), 1.0 / math.sqrt(dim)),
        'proj_in_w':  nrm((embedding_dim, dim), 0.05),
        'proj_in_b':  nrm((1, dim), 0.05),
        'proj_out_w': nrm((dim, output_dim), 0.05),
        'proj_out_b': nrm((1, output_dim), 0.05),
        'norm_out_w': jnp.ones((1, output_dim), jnp.float32),
        'norm_out_b': jnp.zeros((1, output_dim), jnp.float32),
        'layers': [],
    }
    for _ in range(depth):
        p['layers'].append(dict(
            wq=nrm((dim, inner), 0.05),
            wkv=nrm((dim, 2 * inner), 0.05),
            wout=nrm((inner, dim), 0.05),
            ln_w=jnp.ones((1, dim), jnp.float32),
            ln_b=jnp.zeros((1, dim), jnp.float32),
            ff_w1=nrm((dim, ff_inner), 0.05),
            ff_w2=nrm((ff_inner, dim), 0.05),
        ))
    return p


def prepare_params(params, *, heads, dim_head):
    """Stack per-layer weights on a depth axis, cast matmul weights to bf16,
    fold the dim_head**-0.5 attention scale into wq, and build the tiny
    head-id vectors used to regenerate the per-head channel mask in-kernel."""
    inner = heads * dim_head
    layers = params['layers']
    L = params['latents'].shape[1]
    scale2 = 1.0 / math.sqrt(dim_head)   # (dim_head ** -0.25) ** 2

    row_head = (jnp.arange(heads * L, dtype=jnp.int32) // L).reshape(heads * L, 1)
    col_head = (jnp.arange(inner, dtype=jnp.int32) // dim_head).reshape(1, inner)

    prep = {
        'latents':    params['latents'],
        'proj_in_w':  params['proj_in_w'].astype(BF16),
        'proj_in_b':  params['proj_in_b'],
        'proj_out_w': params['proj_out_w'].astype(BF16),
        'proj_out_b': params['proj_out_b'],
        'norm_out_w': params['norm_out_w'],
        'norm_out_b': params['norm_out_b'],
        'row_head':   row_head,
        'col_head':   col_head,
        'wq':   jnp.stack([l['wq'] * scale2 for l in layers]).astype(BF16),
        'wkv':  jnp.stack([l['wkv'] for l in layers]).astype(BF16),
        'wout': jnp.stack([l['wout'] for l in layers]).astype(BF16),
        'ln_w': jnp.stack([l['ln_w'] for l in layers]),
        'ln_b': jnp.stack([l['ln_b'] for l in layers]),
        'ff_w1': jnp.stack([l['ff_w1'] for l in layers]).astype(BF16),
        'ff_w2': jnp.stack([l['ff_w2'] for l in layers]).astype(BF16),
    }
    return prep


# ----------------------------------------------------------------------------
# forward pass (Pallas)
# ----------------------------------------------------------------------------
def resampler_forward(prep, x, *, heads, dim_head):
    B, N, E = x.shape
    emb_dim, dim = prep['proj_in_w'].shape
    depth = prep['wq'].shape[0]
    L = prep['latents'].shape[1]
    inner = heads * dim_head
    ffi = prep['ff_w1'].shape[2]
    out_dim = prep['proj_out_w'].shape[1]
    vmem_limit = _vmem_limit_bytes()

    # pos_emb / mean-pooled-latents branches are disabled by the default config
    # (apply_pos_emb=False, num_latents_mean_pooled=0), matching the reference.

    # pad / truncate input feature dim to proj_in's expected in_features (glue).
    if E < emb_dim:
        x = jnp.pad(x, ((0, 0), (0, 0), (0, emb_dim - E)))
    elif E > emb_dim:
        x = x[:, :, :emb_dim]

    # ---- proj_in: row-tiled so the HBM->VMEM DMA pipelines against the MXU ----
    BN = B * N
    x2 = x.reshape(BN, emb_dim).astype(BF16)   # bf16 input halves proj_in DMA
    row_blk = min(BN, 1024)
    pad_rows = (-BN) % row_blk
    if pad_rows:
        x2 = jnp.pad(x2, ((0, pad_rows), (0, 0)))
    rows = BN + pad_rows

    xp = pl.pallas_call(
        proj_in_kernel,
        out_shape=jax.ShapeDtypeStruct((rows, dim), BF16),
        grid_spec=pltpu.PrefetchScalarGridSpec(
            num_scalar_prefetch=0,
            grid=(rows // row_blk,),
            in_specs=[pl.BlockSpec((row_blk, emb_dim), lambda i: (i, 0)),
                      pl.BlockSpec((emb_dim, dim), lambda i: (0, 0)),
                      pl.BlockSpec((1, dim), lambda i: (0, 0))],
            out_specs=pl.BlockSpec((row_blk, dim), lambda i: (i, 0))),
        compiler_params=pltpu.CompilerParams(
            dimension_semantics=("parallel",),
            vmem_limit_bytes=vmem_limit),
    )(x2, prep['proj_in_w'], prep['proj_in_b'])
    xflat = xp[:BN]                            # (B*N, dim) bf16

    # ---- fused layer stack: grid = (depth,), full batch per grid step ----
    BL = B * L
    HL = heads * L
    lat0 = jnp.tile(prep['latents'][0], (B, 1))    # (B*L, dim) f32

    layer_kernel = functools.partial(
        resampler_layers_kernel, B=B, N=N, L=L, heads=heads, dim_head=dim_head)

    latents = pl.pallas_call(
        layer_kernel,
        out_shape=jax.ShapeDtypeStruct((BL, dim), BF16),
        grid_spec=pltpu.PrefetchScalarGridSpec(
            num_scalar_prefetch=0,
            grid=(depth,),
            in_specs=[
                pl.BlockSpec((BL, dim),           lambda d: (0, 0)),     # latents0
                pl.BlockSpec((BN, dim),           lambda d: (0, 0)),     # x_proj
                pl.BlockSpec((HL, 1),             lambda d: (0, 0)),     # row head-id
                pl.BlockSpec((1, inner),          lambda d: (0, 0)),     # col head-id
                pl.BlockSpec((1, dim, inner),     lambda d: (d, 0, 0)),  # wq
                pl.BlockSpec((1, dim, 2 * inner), lambda d: (d, 0, 0)),  # wkv
                pl.BlockSpec((1, inner, dim),     lambda d: (d, 0, 0)),  # wout
                pl.BlockSpec((1, 1, dim),         lambda d: (d, 0, 0)),  # ln_w
                pl.BlockSpec((1, 1, dim),         lambda d: (d, 0, 0)),  # ln_b
                pl.BlockSpec((1, dim, ffi),       lambda d: (d, 0, 0)),  # ff_w1
                pl.BlockSpec((1, ffi, dim),       lambda d: (d, 0, 0)),  # ff_w2
            ],
            out_specs=pl.BlockSpec((BL, dim), lambda d: (0, 0)),
            scratch_shapes=[pltpu.VMEM((BL, dim), jnp.float32)]),
        compiler_params=pltpu.CompilerParams(
            # depth carries the latent state -> must stay sequential.
            dimension_semantics=("arbitrary",),
            vmem_limit_bytes=vmem_limit),
    )(lat0, xflat, prep['row_head'], prep['col_head'],
      prep['wq'], prep['wkv'], prep['wout'],
      prep['ln_w'], prep['ln_b'], prep['ff_w1'], prep['ff_w2'])

    # ---- proj_out + norm_out: row-tiled over the flattened (B*L) rows ----
    row_blk_o = min(BL, 256)
    pad_o = (-BL) % row_blk_o
    latf = latents
    if pad_o:
        latf = jnp.pad(latf, ((0, pad_o), (0, 0)))
    rows_o = BL + pad_o

    out = pl.pallas_call(
        proj_out_kernel,
        out_shape=jax.ShapeDtypeStruct((rows_o, out_dim), jnp.float32),
        grid_spec=pltpu.PrefetchScalarGridSpec(
            num_scalar_prefetch=0,
            grid=(rows_o // row_blk_o,),
            in_specs=[pl.BlockSpec((row_blk_o, dim), lambda i: (i, 0)),
                      pl.BlockSpec((dim, out_dim),   lambda i: (0, 0)),
                      pl.BlockSpec((1, out_dim),     lambda i: (0, 0)),
                      pl.BlockSpec((1, out_dim),     lambda i: (0, 0)),
                      pl.BlockSpec((1, out_dim),     lambda i: (0, 0))],
            out_specs=pl.BlockSpec((row_blk_o, out_dim), lambda i: (i, 0))),
        compiler_params=pltpu.CompilerParams(
            dimension_semantics=("parallel",),
            vmem_limit_bytes=vmem_limit),
    )(latf, prep['proj_out_w'], prep['proj_out_b'],
      prep['norm_out_w'], prep['norm_out_b'])
    return out[:BL].reshape(B, L, out_dim)


# ----------------------------------------------------------------------------
# pure-JAX f32 reference (mirrors the PyTorch math) for a correctness check
# ----------------------------------------------------------------------------
def resampler_reference(params, x, *, heads, dim_head):
    B, N, E = x.shape
    emb_dim, dim = params['proj_in_w'].shape
    L = params['latents'].shape[1]
    inner = heads * dim_head

    if E < emb_dim:
        x = jnp.pad(x, ((0, 0), (0, 0), (0, emb_dim - E)))
    elif E > emb_dim:
        x = x[:, :, :emb_dim]

    xp = x @ params['proj_in_w'] + params['proj_in_b']
    lat = jnp.tile(params['latents'], (B, 1, 1))

    scale = 1.0 / math.sqrt(math.sqrt(dim_head))
    for lyr in params['layers']:
        kv_in = jnp.concatenate([xp, lat], axis=1)
        q = lat @ lyr['wq']
        kv = kv_in @ lyr['wkv']
        k, v = kv[:, :, :inner], kv[:, :, inner:]
        q = q.reshape(B, L, heads, dim_head).transpose(0, 2, 1, 3)
        k = k.reshape(B, -1, heads, dim_head).transpose(0, 2, 1, 3)
        v = v.reshape(B, -1, heads, dim_head).transpose(0, 2, 1, 3)
        w = jnp.einsum('bhld,bhnd->bhln', q * scale, k * scale)
        w = jax.nn.softmax(w, axis=-1)
        o = jnp.einsum('bhln,bhnd->bhld', w, v)
        o = o.transpose(0, 2, 1, 3).reshape(B, L, inner)
        lat = o @ lyr['wout'] + lat

        h = _layernorm(lat, lyr['ln_w'], lyr['ln_b'])
        h = h @ lyr['ff_w1']
        h = jax.nn.gelu(h, approximate=False)
        h = h @ lyr['ff_w2']
        lat = h + lat

    y = lat @ params['proj_out_w'] + params['proj_out_b']
    return _layernorm(y, params['norm_out_w'], params['norm_out_b'])


# ----------------------------------------------------------------------------
if __name__ == "__main__":
    cfg = dict(dim=32, depth=2, dim_head=8, heads=4, num_queries=8,
               embedding_dim=16, output_dim=32, ff_mult=4)
    B, N = 2, 8

    key = jax.random.PRNGKey(0)
    k_param, k_x = jax.random.split(key)
    params = init_params(k_param, **cfg)
    x = jax.random.normal(k_x, (B, N, cfg['embedding_dim']), jnp.float32)

    prep = prepare_params(params, heads=cfg['heads'], dim_head=cfg['dim_head'])
    fwd = jax.jit(functools.partial(resampler_forward,
                                    heads=cfg['heads'], dim_head=cfg['dim_head']))
    out = fwd(prep, x)
    jax.block_until_ready(out)

    ref = resampler_reference(params, x,
                              heads=cfg['heads'], dim_head=cfg['dim_head'])
    assert out.shape == (B, cfg['num_queries'], cfg['output_dim'])
    max_err = float(jnp.max(jnp.abs(out - ref)))
    # bf16 matmul inputs vs. the f32 reference -> loose-ish tolerance.
    assert jnp.allclose(out, ref, atol=5e-2, rtol=5e-2), f"max err {max_err}"

    print("KERNEL_OK")
</pallas_src>

<mosaic_0001>
module attributes {stable_mosaic.version = 11 : i64} {
  func.func @proj_in_kernel(%arg0: i32, %arg1: memref<16x16xbf16, #tpu.memory_space<vmem>>, %arg2: memref<16x32xbf16, #tpu.memory_space<vmem>>, %arg3: memref<1x32xf32, #tpu.memory_space<vmem>>, %arg4: memref<16x32xbf16, #tpu.memory_space<vmem>>) attributes {dimension_semantics = [#tpu.dimension_semantics<parallel>], iteration_bounds = array<i64: 1>, scalar_prefetch = 0 : i64, scratch_operands = 0 : i64, tpu.core_type = #tpu.core_type<tc>, window_params = [{transform_indices = @transform_0, window_bounds = array<i64: 16, 16>}, {pipeline_mode = #tpu.pipeline_mode<synchronous>, transform_indices = @transform_1, window_bounds = array<i64: 16, 32>}, {pipeline_mode = #tpu.pipeline_mode<synchronous>, transform_indices = @transform_2, window_bounds = array<i64: 1, 32>}, {transform_indices = @transform_3, window_bounds = array<i64: 16, 32>}]} {
    %c0 = arith.constant 0 : index
    %c0_0 = arith.constant 0 : index
    %0 = vector.load %arg1[%c0, %c0_0] : memref<16x16xbf16, #tpu.memory_space<vmem>>, vector<16x16xbf16>
    %c0_1 = arith.constant 0 : index
    %c0_2 = arith.constant 0 : index
    %1 = vector.load %arg2[%c0_1, %c0_2] : memref<16x32xbf16, #tpu.memory_space<vmem>>, vector<16x32xbf16>
    %cst = arith.constant dense<0.000000e+00> : vector<16x32xf32>
    %2 = tpu.matmul %0, %1, %cst {dimension_numbers = #tpu.dot_dimension_numbers<[1], [0], [0], [1], [0, 0, 1, 1], [], []>} : vector<16x16xbf16>, vector<16x32xbf16>, vector<16x32xf32> -> vector<16x32xf32>
    %c0_3 = arith.constant 0 : index
    %c0_4 = arith.constant 0 : index
    %3 = vector.load %arg3[%c0_3, %c0_4] : memref<1x32xf32, #tpu.memory_space<vmem>>, vector<1x32xf32>
    %4 = vector.broadcast %3 : vector<1x32xf32> to vector<16x32xf32>
    %5 = arith.addf %2, %4 : vector<16x32xf32>
    %6 = arith.truncf %5 : vector<16x32xf32> to vector<16x32xbf16>
    %c0_5 = arith.constant 0 : index
    %c0_6 = arith.constant 0 : index
    %7 = vector.load %arg4[%c0_5, %c0_6] : memref<16x32xbf16, #tpu.memory_space<vmem>>, vector<16x32xbf16>
    tpu.vector_store %arg4[%c0_5, %c0_6], %6 {strides = array<i32>} : memref<16x32xbf16, #tpu.memory_space<vmem>>, vector<16x32xbf16>,
    return
  }
  func.func @transform_0(%arg0: i32) -> (i32, i32) {
    %c0_i32 = arith.constant 0 : i32
    %c0_i32_0 = arith.constant 0 : i32
    return %arg0, %c0_i32 : i32, i32
  }
  func.func @transform_1(%arg0: i32) -> (i32, i32) {
    %c0_i32 = arith.constant 0 : i32
    %c0_i32_0 = arith.constant 0 : i32
    %c0_i32_1 = arith.constant 0 : i32
    return %c0_i32, %c0_i32_0 : i32, i32
  }
  func.func @transform_2(%arg0: i32) -> (i32, i32) {
    %c0_i32 = arith.constant 0 : i32
    %c0_i32_0 = arith.constant 0 : i32
    %c0_i32_1 = arith.constant 0 : i32
    return %c0_i32, %c0_i32_0 : i32, i32
  }
  func.func @transform_3(%arg0: i32) -> (i32, i32) {
    %c0_i32 = arith.constant 0 : i32
    %c0_i32_0 = arith.constant 0 : i32
    return %arg0, %c0_i32 : i32, i32
  }
}

module attributes {stable_mosaic.version = 11 : i64} {
  func.func @proj_out_kernel(%arg0: i32, %arg1: memref<16x32xbf16, #tpu.memory_space<vmem>>, %arg2: memref<32x32xbf16, #tpu.memory_space<vmem>>, %arg3: memref<1x32xf32, #tpu.memory_space<vmem>>, %arg4: memref<1x32xf32, #tpu.memory_space<vmem>>, %arg5: memref<1x32xf32, #tpu.memory_space<vmem>>, %arg6: memref<16x32xf32, #tpu.memory_space<vmem>>) attributes {dimension_semantics = [#tpu.dimension_semantics<parallel>], iteration_bounds = array<i64: 1>, scalar_prefetch = 0 : i64, scratch_operands = 0 : i64, tpu.core_type = #tpu.core_type<tc>, window_params = [{transform_indices = @transform_0, window_bounds = array<i64: 16, 32>}, {pipeline_mode = #tpu.pipeline_mode<synchronous>, transform_indices = @transform_1, window_bounds = array<i64: 32, 32>}, {pipeline_mode = #tpu.pipeline_mode<synchronous>, transform_indices = @transform_2, window_bounds = array<i64: 1, 32>}, {pipeline_mode = #tpu.pipeline_mode<synchronous>, transform_indices = @transform_3, window_bounds = array<i64: 1, 32>}, {pipeline_mode = #tpu.pipeline_mode<synchronous>, transform_indices = @transform_4, window_bounds = array<i64: 1, 32>}, {transform_indices = @transform_5, window_bounds = array<i64: 16, 32>}]} {
    %c0 = arith.constant 0 : index
    %c0_0 = arith.constant 0 : index
    %0 = vector.load %arg1[%c0, %c0_0] : memref<16x32xbf16, #tpu.memory_space<vmem>>, vector<16x32xbf16>
    %c0_1 = arith.constant 0 : index
    %c0_2 = arith.constant 0 : index
    %1 = vector.load %arg2[%c0_1, %c0_2] : memref<32x32xbf16, #tpu.memory_space<vmem>>, vector<32x32xbf16>
    %cst = arith.constant dense<0.000000e+00> : vector<16x32xf32>
    %2 = tpu.matmul %0, %1, %cst {dimension_numbers = #tpu.dot_dimension_numbers<[1], [0], [0], [1], [0, 0, 1, 1], [], []>} : vector<16x32xbf16>, vector<32x32xbf16>, vector<16x32xf32> -> vector<16x32xf32>
    %c0_3 = arith.constant 0 : index
    %c0_4 = arith.constant 0 : index
    %3 = vector.load %arg3[%c0_3, %c0_4] : memref<1x32xf32, #tpu.memory_space<vmem>>, vector<1x32xf32>
    %4 = vector.broadcast %3 : vector<1x32xf32> to vector<16x32xf32>
    %5 = arith.addf %2, %4 : vector<16x32xf32>
    %c0_5 = arith.constant 0 : index
    %c0_6 = arith.constant 0 : index
    %6 = vector.load %arg4[%c0_5, %c0_6] : memref<1x32xf32, #tpu.memory_space<vmem>>, vector<1x32xf32>
    %c0_7 = arith.constant 0 : index
    %c0_8 = arith.constant 0 : index
    %7 = vector.load %arg5[%c0_7, %c0_8] : memref<1x32xf32, #tpu.memory_space<vmem>>, vector<1x32xf32>
    %cst_9 = arith.constant dense<0.000000e+00> : vector<16xf32>
    %8 = vector.multi_reduction <add>, %5, %cst_9 [1] : vector<16x32xf32> to vector<16xf32>
    %9 = vector.shape_cast %8 : vector<16xf32> to vector<16x1xf32>
    %cst_10 = arith.constant 3.200000e+01 : f32
    %10 = vector.broadcast %cst_10 : f32 to vector<16x1xf32>
    %11 = arith.divf %9, %10 : vector<16x1xf32>
    %12 = vector.broadcast %11 : vector<16x1xf32> to vector<16x32xf32>
    %13 = arith.subf %5, %12 : vector<16x32xf32>
    %14 = arith.mulf %13, %13 : vector<16x32xf32>
    %cst_11 = arith.constant dense<0.000000e+00> : vector<16xf32>
    %15 = vector.multi_reduction <add>, %14, %cst_11 [1] : vector<16x32xf32> to vector<16xf32>
    %16 = vector.shape_cast %15 : vector<16xf32> to vector<16x1xf32>
    %cst_12 = arith.constant 3.200000e+01 : f32
    %17 = vector.broadcast %cst_12 : f32 to vector<16x1xf32>
    %18 = arith.divf %16, %17 : vector<16x1xf32>
    %19 = vector.broadcast %11 : vector<16x1xf32> to vector<16x32xf32>
    %20 = arith.subf %5, %19 : vector<16x32xf32>
    %cst_13 = arith.constant 9.99999974E-6 : f32
    %21 = vector.broadcast %cst_13 : f32 to vector<16x1xf32>
    %22 = arith.addf %18, %21 : vector<16x1xf32>
    %23 = math.rsqrt %22 : vector<16x1xf32>
    %24 = vector.broadcast %23 : vector<16x1xf32> to vector<16x32xf32>
    %25 = arith.mulf %20, %24 : vector<16x32xf32>
    %26 = vector.broadcast %6 : vector<1x32xf32> to vector<16x32xf32>
    %27 = arith.mulf %25, %26 : vector<16x32xf32>
    %28 = vector.broadcast %7 : vector<1x32xf32> to vector<16x32xf32>
    %29 = arith.addf %27, %28 : vector<16x32xf32>
    %c0_14 = arith.constant 0 : index
    %c0_15 = arith.constant 0 : index
    %30 = vector.load %arg6[%c0_14, %c0_15] : memref<16x32xf32, #tpu.memory_space<vmem>>, vector<16x32xf32>
    tpu.vector_store %arg6[%c0_14, %c0_15], %29 {strides = array<i32>} : memref<16x32xf32, #tpu.memory_space<vmem>>, vector<16x32xf32>,
    return
  }
  func.func @transform_0(%arg0: i32) -> (i32, i32) {
    %c0_i32 = arith.constant 0 : i32
    %c0_i32_0 = arith.constant 0 : i32
    return %arg0, %c0_i32 : i32, i32
  }
  func.func @transform_1(%arg0: i32) -> (i32, i32) {
    %c0_i32 = arith.constant 0 : i32
    %c0_i32_0 = arith.constant 0 : i32
    %c0_i32_1 = arith.constant 0 : i32
    return %c0_i32, %c0_i32_0 : i32, i32
  }
  func.func @transform_2(%arg0: i32) -> (i32, i32) {
    %c0_i32 = arith.constant 0 : i32
    %c0_i32_0 = arith.constant 0 : i32
    %c0_i32_1 = arith.constant 0 : i32
    return %c0_i32, %c0_i32_0 : i32, i32
  }
  func.func @transform_3(%arg0: i32) -> (i32, i32) {
    %c0_i32 = arith.constant 0 : i32
    %c0_i32_0 = arith.constant 0 : i32
    %c0_i32_1 = arith.constant 0 : i32
    return %c0_i32, %c0_i32_0 : i32, i32
  }
  func.func @transform_4(%arg0: i32) -> (i32, i32) {
    %c0_i32 = arith.constant 0 : i32
    %c0_i32_0 = arith.constant 0 : i32
    %c0_i32_1 = arith.constant 0 : i32
    return %c0_i32, %c0_i32_0 : i32, i32
  }
  func.func @transform_5(%arg0: i32) -> (i32, i32) {
    %c0_i32 = arith.constant 0 : i32
    %c0_i32_0 = arith.constant 0 : i32
    return %arg0, %c0_i32 : i32, i32
  }
}

module attributes {stable_mosaic.version = 11 : i64} {
  func.func @resampler_layers_kernel(%arg0: i32, %arg1: memref<16x32xf32, #tpu.memory_space<vmem>>, %arg2: memref<16x32xbf16, #tpu.memory_space<vmem>>, %arg3: memref<32x1xi32, #tpu.memory_space<vmem>>, %arg4: memref<1x32xi32, #tpu.memory_space<vmem>>, %arg5: memref<1x32x32xbf16, #tpu.memory_space<vmem>>, %arg6: memref<1x32x64xbf16, #tpu.memory_space<vmem>>, %arg7: memref<1x32x32xbf16, #tpu.memory_space<vmem>>, %arg8: memref<1x1x32xf32, #tpu.memory_space<vmem>>, %arg9: memref<1x1x32xf32, #tpu.memory_space<vmem>>, %arg10: memref<1x32x128xbf16, #tpu.memory_space<vmem>>, %arg11: memref<1x128x32xbf16, #tpu.memory_space<vmem>>, %arg12: memref<16x32xbf16, #tpu.memory_space<vmem>>, %arg13: memref<16x32xf32, #tpu.memory_space<vmem>>) attributes {dimension_semantics = [#tpu.dimension_semantics<arbitrary>], iteration_bounds = array<i64: 2>, scalar_prefetch = 0 : i64, scratch_operands = 1 : i64, tpu.core_type = #tpu.core_type<tc>, window_params = [{pipeline_mode = #tpu.pipeline_mode<synchronous>, transform_indices = @transform_0, window_bounds = array<i64: 16, 32>}, {pipeline_mode = #tpu.pipeline_mode<synchronous>, transform_indices = @transform_1, window_bounds = array<i64: 16, 32>}, {pipeline_mode = #tpu.pipeline_mode<synchronous>, transform_indices = @transform_2, window_bounds = array<i64: 32, 1>}, {pipeline_mode = #tpu.pipeline_mode<synchronous>, transform_indices = @transform_3, window_bounds = array<i64: 1, 32>}, {transform_indices = @transform_4, window_bounds = array<i64: 1, 32, 32>}, {transform_indices = @transform_5, window_bounds = array<i64: 1, 32, 64>}, {transform_indices = @transform_6, window_bounds = array<i64: 1, 32, 32>}, {transform_indices = @transform_7, window_bounds = array<i64: 1, 1, 32>}, {transform_indices = @transform_8, window_bounds = array<i64: 1, 1, 32>}, {transform_indices = @transform_9, window_bounds = array<i64: 1, 32, 128>}, {transform_indices = @transform_10, window_bounds = array<i64: 1, 128, 32>}, {pipeline_mode = #tpu.pipeline_mode<synchronous>, transform_indices = @transform_11, window_bounds = array<i64: 16, 32>}]} {
    %c0_i32 = arith.constant 0 : i32
    %0 = arith.cmpi eq, %arg0, %c0_i32 : i32
    %1 = arith.extui %0 : i1 to i32
    %c0_i32_0 = arith.constant 0 : i32
    %2 = arith.cmpi ne, %1, %c0_i32_0 : i32
    scf.if %2 {
      %c0_78 = arith.constant 0 : index
      %c0_79 = arith.constant 0 : index
      %210 = vector.load %arg1[%c0_78, %c0_79] : memref<16x32xf32, #tpu.memory_space<vmem>>, vector<16x32xf32>
      %c0_80 = arith.constant 0 : index
      %c0_81 = arith.constant 0 : index
      %211 = vector.load %arg13[%c0_80, %c0_81] : memref<16x32xf32, #tpu.memory_space<vmem>>, vector<16x32xf32>
      tpu.vector_store %arg13[%c0_80, %c0_81], %210 {strides = array<i32>} : memref<16x32xf32, #tpu.memory_space<vmem>>, vector<16x32xf32>,
    } else {
    }
    %c0 = arith.constant 0 : index
    %c0_1 = arith.constant 0 : index
    %3 = vector.load %arg13[%c0, %c0_1] : memref<16x32xf32, #tpu.memory_space<vmem>>, vector<16x32xf32>
    %4 = arith.truncf %3 : vector<16x32xf32> to vector<16x32xbf16>
    %c0_2 = arith.constant 0 : index
    %c0_3 = arith.constant 0 : index
    %5 = vector.load %arg2[%c0_2, %c0_3] : memref<16x32xbf16, #tpu.memory_space<vmem>>, vector<16x32xbf16>
    %c0_4 = arith.constant 0 : index
    %c0_5 = arith.constant 0 : index
    %c0_6 = arith.constant 0 : index
    %6 = vector.load %arg5[%c0_4, %c0_5, %c0_6] : memref<1x32x32xbf16, #tpu.memory_space<vmem>>, vector<1x32x32xbf16>
    %7 = vector.shape_cast %6 : vector<1x32x32xbf16> to vector<32x32xbf16>
    %c0_7 = arith.constant 0 : index
    %c0_8 = arith.constant 0 : index
    %c0_9 = arith.constant 0 : index
    %8 = vector.load %arg6[%c0_7, %c0_8, %c0_9] : memref<1x32x64xbf16, #tpu.memory_space<vmem>>, vector<1x32x64xbf16>
    %9 = vector.shape_cast %8 : vector<1x32x64xbf16> to vector<32x64xbf16>
    %cst = arith.constant dense<0.000000e+00> : vector<16x32xf32>
    %10 = tpu.matmul %4, %7, %cst {dimension_numbers = #tpu.dot_dimension_numbers<[1], [0], [0], [1], [0, 0, 1, 1], [], []>} : vector<16x32xbf16>, vector<32x32xbf16>, vector<16x32xf32> -> vector<16x32xf32>
    %cst_10 = arith.constant dense<0.000000e+00> : vector<16x64xf32>
    %11 = tpu.matmul %5, %9, %cst_10 {dimension_numbers = #tpu.dot_dimension_numbers<[1], [0], [0], [1], [0, 0, 1, 1], [], []>} : vector<16x32xbf16>, vector<32x64xbf16>, vector<16x64xf32> -> vector<16x64xf32>
    %cst_11 = arith.constant dense<0.000000e+00> : vector<16x64xf32>
    %12 = tpu.matmul %4, %9, %cst_11 {dimension_numbers = #tpu.dot_dimension_numbers<[1], [0], [0], [1], [0, 0, 1, 1], [], []>} : vector<16x32xbf16>, vector<32x64xbf16>, vector<16x64xf32> -> vector<16x64xf32>
    %13 = vector.extract_strided_slice %11 {offsets = [0, 0], sizes = [16, 32], strides = [1, 1]} : vector<16x64xf32> to vector<16x32xf32>
    %14 = arith.truncf %13 : vector<16x32xf32> to vector<16x32xbf16>
    %15 = vector.extract_strided_slice %11 {offsets = [0, 32], sizes = [16, 32], strides = [1, 1]} : vector<16x64xf32> to vector<16x32xf32>
    %16 = arith.truncf %15 : vector<16x32xf32> to vector<16x32xbf16>
    %17 = vector.extract_strided_slice %12 {offsets = [0, 0], sizes = [16, 32], strides = [1, 1]} : vector<16x64xf32> to vector<16x32xf32>
    %18 = arith.truncf %17 : vector<16x32xf32> to vector<16x32xbf16>
    %19 = vector.extract_strided_slice %12 {offsets = [0, 32], sizes = [16, 32], strides = [1, 1]} : vector<16x64xf32> to vector<16x32xf32>
    %20 = arith.truncf %19 : vector<16x32xf32> to vector<16x32xbf16>
    %c0_12 = arith.constant 0 : index
    %c0_13 = arith.constant 0 : index
    %21 = vector.load %arg3[%c0_12, %c0_13] : memref<32x1xi32, #tpu.memory_space<vmem>>, vector<32x1xi32>
    %c0_14 = arith.constant 0 : index
    %c0_15 = arith.constant 0 : index
    %22 = vector.load %arg4[%c0_14, %c0_15] : memref<1x32xi32, #tpu.memory_space<vmem>>, vector<1x32xi32>
    %23 = vector.broadcast %21 : vector<32x1xi32> to vector<32x32xi32>
    %24 = vector.broadcast %22 : vector<1x32xi32> to vector<32x32xi32>
    %25 = arith.cmpi eq, %23, %24 : vector<32x32xi32>
    %26 = arith.extui %25 : vector<32x32xi1> to vector<32x32xi32>
    %27 = arith.sitofp %26 : vector<32x32xi32> to vector<32x32xf32>
    %28 = vector.extract_strided_slice %10 {offsets = [0, 0], sizes = [8, 32], strides = [1, 1]} : vector<16x32xf32> to vector<8x32xf32>
    %29 = vector.extract_strided_slice %14 {offsets = [0, 0], sizes = [8, 32], strides = [1, 1]} : vector<16x32xbf16> to vector<8x32xbf16>
    %30 = vector.extract_strided_slice %16 {offsets = [0, 0], sizes = [8, 32], strides = [1, 1]} : vector<16x32xbf16> to vector<8x32xbf16>
    %31 = vector.extract_strided_slice %18 {offsets = [0, 0], sizes = [8, 32], strides = [1, 1]} : vector<16x32xbf16> to vector<8x32xbf16>
    %32 = vector.extract_strided_slice %20 {offsets = [0, 0], sizes = [8, 32], strides = [1, 1]} : vector<16x32xbf16> to vector<8x32xbf16>
    %33 = tpu.concatenate %28, %28, %28, %28 in 0 : vector<8x32xf32>, vector<8x32xf32>, vector<8x32xf32>, vector<8x32xf32> -> vector<32x32xf32>
    %34 = arith.mulf %33, %27 : vector<32x32xf32>
    %35 = arith.truncf %34 : vector<32x32xf32> to vector<32x32xbf16>
    %cst_16 = arith.constant dense<0.000000e+00> : vector<32x8xf32>
    %36 = tpu.matmul %35, %29, %cst_16 {dimension_numbers = #tpu.dot_dimension_numbers<[1], [1], [0], [0], [0, 0, 1, 0], [], []>} : vector<32x32xbf16>, vector<8x32xbf16>, vector<32x8xf32> -> vector<32x8xf32>
    %cst_17 = arith.constant dense<0.000000e+00> : vector<32x8xf32>
    %37 = tpu.matmul %35, %31, %cst_17 {dimension_numbers = #tpu.dot_dimension_numbers<[1], [1], [0], [0], [0, 0, 1, 0], [], []>} : vector<32x32xbf16>, vector<8x32xbf16>, vector<32x8xf32> -> vector<32x8xf32>
    %cst_18 = arith.constant dense<0xFF800000> : vector<32xf32>
    %38 = vector.multi_reduction <maximumf>, %36, %cst_18 [1] : vector<32x8xf32> to vector<32xf32>
    %39 = vector.shape_cast %38 : vector<32xf32> to vector<32x1xf32>
    %cst_19 = arith.constant dense<0xFF800000> : vector<32xf32>
    %40 = vector.multi_reduction <maximumf>, %37, %cst_19 [1] : vector<32x8xf32> to vector<32xf32>
    %41 = vector.shape_cast %40 : vector<32xf32> to vector<32x1xf32>
    %42 = arith.maximumf %39, %41 : vector<32x1xf32>
    %43 = vector.broadcast %42 : vector<32x1xf32> to vector<32x8xf32>
    %44 = arith.subf %36, %43 : vector<32x8xf32>
    %45 = math.exp %44 : vector<32x8xf32>
    %46 = vector.broadcast %42 : vector<32x1xf32> to vector<32x8xf32>
    %47 = arith.subf %37, %46 : vector<32x8xf32>
    %48 = math.exp %47 : vector<32x8xf32>
    %cst_20 = arith.constant dense<0.000000e+00> : vector<32xf32>
    %49 = vector.multi_reduction <add>, %45, %cst_20 [1] : vector<32x8xf32> to vector<32xf32>
    %50 = vector.shape_cast %49 : vector<32xf32> to vector<32x1xf32>
    %cst_21 = arith.constant dense<0.000000e+00> : vector<32xf32>
    %51 = vector.multi_reduction <add>, %48, %cst_21 [1] : vector<32x8xf32> to vector<32xf32>
    %52 = vector.shape_cast %51 : vector<32xf32> to vector<32x1xf32>
    %53 = arith.addf %50, %52 : vector<32x1xf32>
    %54 = arith.truncf %45 : vector<32x8xf32> to vector<32x8xbf16>
    %cst_22 = arith.constant dense<0.000000e+00> : vector<32x32xf32>
    %55 = tpu.matmul %54, %30, %cst_22 {dimension_numbers = #tpu.dot_dimension_numbers<[1], [0], [0], [1], [0, 0, 1, 1], [], []>} : vector<32x8xbf16>, vector<8x32xbf16>, vector<32x32xf32> -> vector<32x32xf32>
    %56 = arith.truncf %48 : vector<32x8xf32> to vector<32x8xbf16>
    %cst_23 = arith.constant dense<0.000000e+00> : vector<32x32xf32>
    %57 = tpu.matmul %56, %32, %cst_23 {dimension_numbers = #tpu.dot_dimension_numbers<[1], [0], [0], [1], [0, 0, 1, 1], [], []>} : vector<32x8xbf16>, vector<8x32xbf16>, vector<32x32xf32> -> vector<32x32xf32>
    %58 = arith.addf %55, %57 : vector<32x32xf32>
    %59 = vector.broadcast %53 : vector<32x1xf32> to vector<32x32xf32>
    %60 = arith.divf %58, %59 : vector<32x32xf32>
    %61 = arith.mulf %60, %27 : vector<32x32xf32>
    %62 = vector.extract_strided_slice %61 {offsets = [0, 0], sizes = [8, 32], strides = [1, 1]} : vector<32x32xf32> to vector<8x32xf32>
    %63 = vector.extract_strided_slice %61 {offsets = [8, 0], sizes = [8, 32], strides = [1, 1]} : vector<32x32xf32> to vector<8x32xf32>
    %64 = arith.addf %62, %63 : vector<8x32xf32>
    %65 = vector.extract_strided_slice %61 {offsets = [16, 0], sizes = [8, 32], strides = [1, 1]} : vector<32x32xf32> to vector<8x32xf32>
    %66 = arith.addf %64, %65 : vector<8x32xf32>
    %67 = vector.extract_strided_slice %61 {offsets = [24, 0], sizes = [8, 32], strides = [1, 1]} : vector<32x32xf32> to vector<8x32xf32>
    %68 = arith.addf %66, %67 : vector<8x32xf32>
    %69 = vector.extract_strided_slice %10 {offsets = [8, 0], sizes = [8, 32], strides = [1, 1]} : vector<16x32xf32> to vector<8x32xf32>
    %70 = vector.extract_strided_slice %14 {offsets = [8, 0], sizes = [8, 32], strides = [1, 1]} : vector<16x32xbf16> to vector<8x32xbf16>
    %71 = vector.extract_strided_slice %16 {offsets = [8, 0], sizes = [8, 32], strides = [1, 1]} : vector<16x32xbf16> to vector<8x32xbf16>
    %72 = vector.extract_strided_slice %18 {offsets = [8, 0], sizes = [8, 32], strides = [1, 1]} : vector<16x32xbf16> to vector<8x32xbf16>
    %73 = vector.extract_strided_slice %20 {offsets = [8, 0], sizes = [8, 32], strides = [1, 1]} : vector<16x32xbf16> to vector<8x32xbf16>
    %74 = tpu.concatenate %69, %69, %69, %69 in 0 : vector<8x32xf32>, vector<8x32xf32>, vector<8x32xf32>, vector<8x32xf32> -> vector<32x32xf32>
    %75 = arith.mulf %74, %27 : vector<32x32xf32>
    %76 = arith.truncf %75 : vector<32x32xf32> to vector<32x32xbf16>
    %cst_24 = arith.constant dense<0.000000e+00> : vector<32x8xf32>
    %77 = tpu.matmul %76, %70, %cst_24 {dimension_numbers = #tpu.dot_dimension_numbers<[1], [1], [0], [0], [0, 0, 1, 0], [], []>} : vector<32x32xbf16>, vector<8x32xbf16>, vector<32x8xf32> -> vector<32x8xf32>
    %cst_25 = arith.constant dense<0.000000e+00> : vector<32x8xf32>
    %78 = tpu.matmul %76, %72, %cst_25 {dimension_numbers = #tpu.dot_dimension_numbers<[1], [1], [0], [0], [0, 0, 1, 0], [], []>} : vector<32x32xbf16>, vector<8x32xbf16>, vector<32x8xf32> -> vector<32x8xf32>
    %cst_26 = arith.constant dense<0xFF800000> : vector<32xf32>
    %79 = vector.multi_reduction <maximumf>, %77, %cst_26 [1] : vector<32x8xf32> to vector<32xf32>
    %80 = vector.shape_cast %79 : vector<32xf32> to vector<32x1xf32>
    %cst_27 = arith.constant dense<0xFF800000> : vector<32xf32>
    %81 = vector.multi_reduction <maximumf>, %78, %cst_27 [1] : vector<32x8xf32> to vector<32xf32>
    %82 = vector.shape_cast %81 : vector<32xf32> to vector<32x1xf32>
    %83 = arith.maximumf %80, %82 : vector<32x1xf32>
    %84 = vector.broadcast %83 : vector<32x1xf32> to vector<32x8xf32>
    %85 = arith.subf %77, %84 : vector<32x8xf32>
    %86 = math.exp %85 : vector<32x8xf32>
    %87 = vector.broadcast %83 : vector<32x1xf32> to vector<32x8xf32>
    %88 = arith.subf %78, %87 : vector<32x8xf32>
    %89 = math.exp %88 : vector<32x8xf32>
    %cst_28 = arith.constant dense<0.000000e+00> : vector<32xf32>
    %90 = vector.multi_reduction <add>, %86, %cst_28 [1] : vector<32x8xf32> to vector<32xf32>
    %91 = vector.shape_cast %90 : vector<32xf32> to vector<32x1xf32>
    %cst_29 = arith.constant dense<0.000000e+00> : vector<32xf32>
    %92 = vector.multi_reduction <add>, %89, %cst_29 [1] : vector<32x8xf32> to vector<32xf32>
    %93 = vector.shape_cast %92 : vector<32xf32> to vector<32x1xf32>
    %94 = arith.addf %91, %93 : vector<32x1xf32>
    %95 = arith.truncf %86 : vector<32x8xf32> to vector<32x8xbf16>
    %cst_30 = arith.constant dense<0.000000e+00> : vector<32x32xf32>
    %96 = tpu.matmul %95, %71, %cst_30 {dimension_numbers = #tpu.dot_dimension_numbers<[1], [0], [0], [1], [0, 0, 1, 1], [], []>} : vector<32x8xbf16>, vector<8x32xbf16>, vector<32x32xf32> -> vector<32x32xf32>
    %97 = arith.truncf %89 : vector<32x8xf32> to vector<32x8xbf16>
    %cst_31 = arith.constant dense<0.000000e+00> : vector<32x32xf32>
    %98 = tpu.matmul %97, %73, %cst_31 {dimension_numbers = #tpu.dot_dimension_numbers<[1], [0], [0], [1], [0, 0, 1, 1], [], []>} : vector<32x8xbf16>, vector<8x32xbf16>, vector<32x32xf32> -> vector<32x32xf32>
    %99 = arith.addf %96, %98 : vector<32x32xf32>
    %100 = vector.broadcast %94 : vector<32x1xf32> to vector<32x32xf32>
    %101 = arith.divf %99, %100 : vector<32x32xf32>
    %102 = arith.mulf %101, %27 : vector<32x32xf32>
    %103 = vector.extract_strided_slice %102 {offsets = [0, 0], sizes = [8, 32], strides = [1, 1]} : vector<32x32xf32> to vector<8x32xf32>
    %104 = vector.extract_strided_slice %102 {offsets = [8, 0], sizes = [8, 32], strides = [1, 1]} : vector<32x32xf32> to vector<8x32xf32>
    %105 = arith.addf %103, %104 : vector<8x32xf32>
    %106 = vector.extract_strided_slice %102 {offsets = [16, 0], sizes = [8, 32], strides = [1, 1]} : vector<32x32xf32> to vector<8x32xf32>
    %107 = arith.addf %105, %106 : vector<8x32xf32>
    %108 = vector.extract_strided_slice %102 {offsets = [24, 0], sizes = [8, 32], strides = [1, 1]} : vector<32x32xf32> to vector<8x32xf32>
    %109 = arith.addf %107, %108 : vector<8x32xf32>
    %110 = tpu.concatenate %68, %109 in 0 : vector<8x32xf32>, vector<8x32xf32> -> vector<16x32xf32>
    %111 = arith.truncf %110 : vector<16x32xf32> to vector<16x32xbf16>
    %c0_32 = arith.constant 0 : index
    %c0_33 = arith.constant 0 : index
    %c0_34 = arith.constant 0 : index
    %112 = vector.load %arg7[%c0_32, %c0_33, %c0_34] : memref<1x32x32xbf16, #tpu.memory_space<vmem>>, vector<1x32x32xbf16>
    %113 = vector.shape_cast %112 : vector<1x32x32xbf16> to vector<32x32xbf16>
    %cst_35 = arith.constant dense<0.000000e+00> : vector<16x32xf32>
    %114 = tpu.matmul %111, %113, %cst_35 {dimension_numbers = #tpu.dot_dimension_numbers<[1], [0], [0], [1], [0, 0, 1, 1], [], []>} : vector<16x32xbf16>, vector<32x32xbf16>, vector<16x32xf32> -> vector<16x32xf32>
    %115 = arith.addf %3, %114 : vector<16x32xf32>
    %c0_36 = arith.constant 0 : index
    %c0_37 = arith.constant 0 : index
    %c0_38 = arith.constant 0 : index
    %116 = vector.load %arg8[%c0_36, %c0_37, %c0_38] : memref<1x1x32xf32, #tpu.memory_space<vmem>>, vector<1x1x32xf32>
    %117 = vector.shape_cast %116 : vector<1x1x32xf32> to vector<1x32xf32>
    %c0_39 = arith.constant 0 : index
    %c0_40 = arith.constant 0 : index
    %c0_41 = arith.constant 0 : index
    %118 = vector.load %arg9[%c0_39, %c0_40, %c0_41] : memref<1x1x32xf32, #tpu.memory_space<vmem>>, vector<1x1x32xf32>
    %119 = vector.shape_cast %118 : vector<1x1x32xf32> to vector<1x32xf32>
    %cst_42 = arith.constant dense<0.000000e+00> : vector<16xf32>
    %120 = vector.multi_reduction <add>, %115, %cst_42 [1] : vector<16x32xf32> to vector<16xf32>
    %121 = vector.shape_cast %120 : vector<16xf32> to vector<16x1xf32>
    %cst_43 = arith.constant 3.200000e+01 : f32
    %122 = vector.broadcast %cst_43 : f32 to vector<16x1xf32>
    %123 = arith.divf %121, %122 : vector<16x1xf32>
    %124 = vector.broadcast %123 : vector<16x1xf32> to vector<16x32xf32>
    %125 = arith.subf %115, %124 : vector<16x32xf32>
    %126 = arith.mulf %125, %125 : vector<16x32xf32>
    %cst_44 = arith.constant dense<0.000000e+00> : vector<16xf32>
    %127 = vector.multi_reduction <add>, %126, %cst_44 [1] : vector<16x32xf32> to vector<16xf32>
    %128 = vector.shape_cast %127 : vector<16xf32> to vector<16x1xf32>
    %cst_45 = arith.constant 3.200000e+01 : f32
    %129 = vector.broadcast %cst_45 : f32 to vector<16x1xf32>
    %130 = arith.divf %128, %129 : vector<16x1xf32>
    %131 = vector.broadcast %123 : vector<16x1xf32> to vector<16x32xf32>
    %132 = arith.subf %115, %131 : vector<16x32xf32>
    %cst_46 = arith.constant 9.99999974E-6 : f32
    %133 = vector.broadcast %cst_46 : f32 to vector<16x1xf32>
    %134 = arith.addf %130, %133 : vector<16x1xf32>
    %135 = math.rsqrt %134 : vector<16x1xf32>
    %136 = vector.broadcast %135 : vector<16x1xf32> to vector<16x32xf32>
    %137 = arith.mulf %132, %136 : vector<16x32xf32>
    %138 = vector.broadcast %117 : vector<1x32xf32> to vector<16x32xf32>
    %139 = arith.mulf %137, %138 : vector<16x32xf32>
    %140 = vector.broadcast %119 : vector<1x32xf32> to vector<16x32xf32>
    %141 = arith.addf %139, %140 : vector<16x32xf32>
    %142 = arith.truncf %141 : vector<16x32xf32> to vector<16x32xbf16>
    %c0_47 = arith.constant 0 : index
    %c0_48 = arith.constant 0 : index
    %c0_49 = arith.constant 0 : index
    %143 = vector.load %arg10[%c0_47, %c0_48, %c0_49] : memref<1x32x128xbf16, #tpu.memory_space<vmem>>, vector<1x32x128xbf16>
    %144 = vector.shape_cast %143 : vector<1x32x128xbf16> to vector<32x128xbf16>
    %cst_50 = arith.constant dense<0.000000e+00> : vector<16x128xf32>
    %145 = tpu.matmul %142, %144, %cst_50 {dimension_numbers = #tpu.dot_dimension_numbers<[1], [0], [0], [1], [0, 0, 1, 1], [], []>} : vector<16x32xbf16>, vector<32x128xbf16>, vector<16x128xf32> -> vector<16x128xf32>
    %cst_51 = arith.constant 5.000000e-01 : f32
    %146 = vector.broadcast %cst_51 : f32 to vector<16x128xf32>
    %147 = arith.mulf %146, %145 : vector<16x128xf32>
    %cst_52 = arith.constant 0.707106769 : f32
    %148 = vector.broadcast %cst_52 : f32 to vector<16x128xf32>
    %149 = arith.mulf %145, %148 : vector<16x128xf32>
    %150 = math.absf %149 : vector<16x128xf32>
    %cst_53 = arith.constant 5.000000e-01 : f32
    %151 = vector.broadcast %cst_53 : f32 to vector<16x128xf32>
    %152 = arith.mulf %151, %150 : vector<16x128xf32>
    %cst_54 = arith.constant 1.000000e+00 : f32
    %153 = vector.broadcast %cst_54 : f32 to vector<16x128xf32>
    %154 = arith.addf %153, %152 : vector<16x128xf32>
    %cst_55 = arith.constant 1.000000e+00 : f32
    %155 = vector.broadcast %cst_55 : f32 to vector<16x128xf32>
    %156 = arith.divf %155, %154 : vector<16x128xf32>
    %cst_56 = arith.constant 0.170872763 : f32
    %157 = vector.broadcast %cst_56 : f32 to vector<16x128xf32>
    %158 = arith.mulf %156, %157 : vector<16x128xf32>
    %cst_57 = arith.constant -0.822152256 : f32
    %159 = vector.broadcast %cst_57 : f32 to vector<16x128xf32>
    %160 = arith.addf %159, %158 : vector<16x128xf32>
    %161 = arith.mulf %156, %160 : vector<16x128xf32>
    %cst_58 = arith.constant 1.48851585 : f32
    %162 = vector.broadcast %cst_58 : f32 to vector<16x128xf32>
    %163 = arith.addf %162, %161 : vector<16x128xf32>
    %164 = arith.mulf %156, %163 : vector<16x128xf32>
    %cst_59 = arith.constant -1.13520396 : f32
    %165 = vector.broadcast %cst_59 : f32 to vector<16x128xf32>
    %166 = arith.addf %165, %164 : vector<16x128xf32>
    %167 = arith.mulf %156, %166 : vector<16x128xf32>
    %cst_60 = arith.constant 0.278868079 : f32
    %168 = vector.broadcast %cst_60 : f32 to vector<16x128xf32>
    %169 = arith.addf %168, %167 : vector<16x128xf32>
    %170 = arith.mulf %156, %169 : vector<16x128xf32>
    %cst_61 = arith.constant -0.186288059 : f32
    %171 = vector.broadcast %cst_61 : f32 to vector<16x128xf32>
    %172 = arith.addf %171, %170 : vector<16x128xf32>
    %173 = arith.mulf %156, %172 : vector<16x128xf32>
    %cst_62 = arith.constant 0.0967841818 : f32
    %174 = vector.broadcast %cst_62 : f32 to vector<16x128xf32>
    %175 = arith.addf %174, %173 : vector<16x128xf32>
    %176 = arith.mulf %156, %175 : vector<16x128xf32>
    %cst_63 = arith.constant 0.374091953 : f32
    %177 = vector.broadcast %cst_63 : f32 to vector<16x128xf32>
    %178 = arith.addf %177, %176 : vector<16x128xf32>
    %179 = arith.mulf %156, %178 : vector<16x128xf32>
    %cst_64 = arith.constant 1.00002372 : f32
    %180 = vector.broadcast %cst_64 : f32 to vector<16x128xf32>
    %181 = arith.addf %180, %179 : vector<16x128xf32>
    %182 = arith.mulf %156, %181 : vector<16x128xf32>
    %cst_65 = arith.constant -1.26551223 : f32
    %183 = vector.broadcast %cst_65 : f32 to vector<16x128xf32>
    %184 = arith.addf %183, %182 : vector<16x128xf32>
    %cst_66 = arith.constant 0.000000e+00 : f32
    %185 = vector.broadcast %cst_66 : f32 to vector<16x128xf32>
    %186 = arith.subf %185, %150 : vector<16x128xf32>
    %187 = arith.mulf %186, %150 : vector<16x128xf32>
    %188 = arith.addf %187, %184 : vector<16x128xf32>
    %189 = math.exp %188 : vector<16x128xf32>
    %190 = arith.mulf %156, %189 : vector<16x128xf32>
    %cst_67 = arith.constant 0.000000e+00 : f32
    %191 = vector.broadcast %cst_67 : f32 to vector<16x128xf32>
    %192 = arith.cmpf oge, %149, %191 : vector<16x128xf32>
    %cst_68 = arith.constant 2.000000e+00 : f32
    %193 = vector.broadcast %cst_68 : f32 to vector<16x128xf32>
    %194 = arith.subf %193, %190 : vector<16x128xf32>
    %195 = arith.select %192, %190, %194 : vector<16x128xi1>, vector<16x128xf32>
    %cst_69 = arith.constant 1.000000e+00 : f32
    %196 = vector.broadcast %cst_69 : f32 to vector<16x128xf32>
    %197 = arith.subf %196, %195 : vector<16x128xf32>
    %cst_70 = arith.constant 1.000000e+00 : f32
    %198 = vector.broadcast %cst_70 : f32 to vector<16x128xf32>
    %199 = arith.addf %198, %197 : vector<16x128xf32>
    %200 = arith.mulf %147, %199 : vector<16x128xf32>
    %201 = arith.truncf %200 : vector<16x128xf32> to vector<16x128xbf16>
    %c0_71 = arith.constant 0 : index
    %c0_72 = arith.constant 0 : index
    %c0_73 = arith.constant 0 : index
    %202 = vector.load %arg11[%c0_71, %c0_72, %c0_73] : memref<1x128x32xbf16, #tpu.memory_space<vmem>>, vector<1x128x32xbf16>
    %203 = vector.shape_cast %202 : vector<1x128x32xbf16> to vector<128x32xbf16>
    %cst_74 = arith.constant dense<0.000000e+00> : vector<16x32xf32>
    %204 = tpu.matmul %201, %203, %cst_74 {dimension_numbers = #tpu.dot_dimension_numbers<[1], [0], [0], [1], [0, 0, 1, 1], [], []>} : vector<16x128xbf16>, vector<128x32xbf16>, vector<16x32xf32> -> vector<16x32xf32>
    %205 = arith.addf %115, %204 : vector<16x32xf32>
    %c0_75 = arith.constant 0 : index
    %c0_76 = arith.constant 0 : index
    %206 = vector.load %arg13[%c0_75, %c0_76] : memref<16x32xf32, #tpu.memory_space<vmem>>, vector<16x32xf32>
    tpu.vector_store %arg13[%c0_75, %c0_76], %205 {strides = array<i32>} : memref<16x32xf32, #tpu.memory_space<vmem>>, vector<16x32xf32>,
    %c1_i32 = arith.constant 1 : i32
    %207 = arith.cmpi eq, %arg0, %c1_i32 : i32
    %208 = arith.extui %207 : i1 to i32
    %c0_i32_77 = arith.constant 0 : i32
    %209 = arith.cmpi ne, %208, %c0_i32_77 : i32
    scf.if %209 {
      %210 = arith.truncf %205 : vector<16x32xf32> to vector<16x32xbf16>
      %c0_78 = arith.constant 0 : index
      %c0_79 = arith.constant 0 : index
      %211 = vector.load %arg12[%c0_78, %c0_79] : memref<16x32xbf16, #tpu.memory_space<vmem>>, vector<16x32xbf16>
      tpu.vector_store %arg12[%c0_78, %c0_79], %210 {strides = array<i32>} : memref<16x32xbf16, #tpu.memory_space<vmem>>, vector<16x32xbf16>,
    } else {
    }
    return
  }
  func.func @transform_0(%arg0: i32) -> (i32, i32) {
    %c0_i32 = arith.constant 0 : i32
    %c0_i32_0 = arith.constant 0 : i32
    %c0_i32_1 = arith.constant 0 : i32
    return %c0_i32, %c0_i32_0 : i32, i32
  }
  func.func @transform_1(%arg0: i32) -> (i32, i32) {
    %c0_i32 = arith.constant 0 : i32
    %c0_i32_0 = arith.constant 0 : i32
    %c0_i32_1 = arith.constant 0 : i32
    return %c0_i32, %c0_i32_0 : i32, i32
  }
  func.func @transform_2(%arg0: i32) -> (i32, i32) {
    %c0_i32 = arith.constant 0 : i32
    %c0_i32_0 = arith.constant 0 : i32
    %c0_i32_1 = arith.constant 0 : i32
    return %c0_i32, %c0_i32_0 : i32, i32
  }
  func.func @transform_3(%arg0: i32) -> (i32, i32) {
    %c0_i32 = arith.constant 0 : i32
    %c0_i32_0 = arith.constant 0 : i32
    %c0_i32_1 = arith.constant 0 : i32
    return %c0_i32, %c0_i32_0 : i32, i32
  }
  func.func @transform_4(%arg0: i32) -> (i32, i32, i32) {
    %c0_i32 = arith.constant 0 : i32
    %c0_i32_0 = arith.constant 0 : i32
    %c0_i32_1 = arith.constant 0 : i32
    return %arg0, %c0_i32, %c0_i32_0 : i32, i32, i32
  }
  func.func @transform_5(%arg0: i32) -> (i32, i32, i32) {
    %c0_i32 = arith.constant 0 : i32
    %c0_i32_0 = arith.constant 0 : i32
    %c0_i32_1 = arith.constant 0 : i32
    return %arg0, %c0_i32, %c0_i32_0 : i32, i32, i32
  }
  func.func @transform_6(%arg0: i32) -> (i32, i32, i32) {
    %c0_i32 = arith.constant 0 : i32
    %c0_i32_0 = arith.constant 0 : i32
    %c0_i32_1 = arith.constant 0 : i32
    return %arg0, %c0_i32, %c0_i32_0 : i32, i32, i32
  }
  func.func @transform_7(%arg0: i32) -> (i32, i32, i32) {
    %c0_i32 = arith.constant 0 : i32
    %c0_i32_0 = arith.constant 0 : i32
    %c0_i32_1 = arith.constant 0 : i32
    return %arg0, %c0_i32, %c0_i32_0 : i32, i32, i32
  }
  func.func @transform_8(%arg0: i32) -> (i32, i32, i32) {
    %c0_i32 = arith.constant 0 : i32
    %c0_i32_0 = arith.constant 0 : i32
    %c0_i32_1 = arith.constant 0 : i32
    return %arg0, %c0_i32, %c0_i32_0 : i32, i32, i32
  }
  func.func @transform_9(%arg0: i32) -> (i32, i32, i32) {
    %c0_i32 = arith.constant 0 : i32
    %c0_i32_0 = arith.constant 0 : i32
    %c0_i32_1 = arith.constant 0 : i32
    return %arg0, %c0_i32, %c0_i32_0 : i32, i32, i32
  }
  func.func @transform_10(%arg0: i32) -> (i32, i32, i32) {
    %c0_i32 = arith.constant 0 : i32
    %c0_i32_0 = arith.constant 0 : i32
    %c0_i32_1 = arith.constant 0 : i32
    return %arg0, %c0_i32, %c0_i32_0 : i32, i32, i32
  }
  func.func @transform_11(%arg0: i32) -> (i32, i32) {
    %c0_i32 = arith.constant 0 : i32
    %c0_i32_0 = arith.constant 0 : i32
    %c0_i32_1 = arith.constant 0 : i32
    return %c0_i32, %c0_i32_0 : i32, i32
  }
}

</mosaic_0001>

<bundles_post_ra>
// kernel: resampler_forward.3
= control target key start
LH: loop header
LB: loop body
LE: loop exit
PB: predicated region body
PF: predicated region fallthrough
CT: control target
= control target key end

     0   :  { %8 = vsyncpa [#allocation3], 0  ;;  %s363_s0 = inlined_call_operand.hbm [shape: bf16[16,16], index: 0, kind: input, shape index: {}]   ;;  %s364_s1 = inlined_call_operand.hbm [shape: bf16[16,32], index: 1, kind: input, shape index: {}]   ;;  %s365_s2 = inlined_call_operand.hbm [shape: f32[1,32], index: 2, kind: input, shape index: {}]   ;;  %s366_s3 = inlined_call_operand.hbm [shape: bf16[16,32], index: 3, kind: output, shape index: {}]  }
   0x1   :  { %9 = vsyncpa [#allocation6], 0 }
   0x2   :  { %10 = vsyncpa [#allocation4], 0  ;;  %s271_s12 = smov [#allocation5]   ;;  %s272_s14 = smov [#allocation2]  }
   0x3   :  { %s28_s13 = sshll.u32 %s271_s12, 4  ;;  %s16_s15 = sshll.u32 %s272_s14, 4  ;;  %s29_s13 = int_to_ptr.vmem [resolvable:$true] %s28_s13  ;;  %s299_s15 = int_to_ptr.vmem [resolvable:$true] %s16_s15 }
   0x4   :  { %s177_s18 = scalar_lea.hbm %s364_s1, 128 }
   0x5   :  { %p178_p0 = scmp.ne.s32.totalorder %s364_s1, %s177_s18  ;;  %p181_p1 = scmp.lt.u32.totalorder %s177_s18, %s364_s1 }
   0x7   :  { %p183_p2 = pnand %p181_p1, %p178_p0 }
   0x9   :  { %186 = shalt.err (!%p183_p2)
}
   0xa   :  { %s187_s23 = scalar_lea.vmem %s29_s13, 128  ;;  %p192_p4 = scmp.lt.s32.totalorder %s29_s13, %s29_s13 }
   0xb   :  { %p188_p3 = scmp.ne.s32.totalorder %s29_s13, %s187_s23  ;;  %p193_p5 = scmp.lt.s32.totalorder %s187_s23, %s187_s23 }
   0xd   :  { %p194_p6 = por %p193_p5, %p192_p4 }
   0xf   :  { %p195_p7 = pnand %p194_p6, %p188_p3 }
  0x11   :  { %198 = shalt.err (!%p195_p7)
}
  0x12   :  { %s273_s24 = smov 64   ;;  %s274_s25 = smov 4  }
  0x13   :  { %34 = dma.hbm_to_vmem [thread:$0]  %s364_s1, 128, %s29_s13, [#allocation6], %s273_s24, %s273_s24, %s274_s25  }
  0x14   :  { %s199_s30 = scalar_lea.hbm %s363_s0, 128 }
  0x15   :  { %p200_p8 = scmp.ne.s32.totalorder %s363_s0, %s199_s30  ;;  %p203_p9 = scmp.lt.u32.totalorder %s199_s30, %s363_s0 }
  0x17   :  { %p205_p10 = pnand %p203_p9, %p200_p8 }
  0x19   :  { %208 = shalt.err (!%p205_p10)
}
  0x1a   :  { %s209_s8 = scalar_lea.vmem %s299_s15, 128  ;;  %p214_p12 = scmp.lt.s32.totalorder %s299_s15, %s299_s15 }
  0x1b   :  { %p210_p11 = scmp.ne.s32.totalorder %s299_s15, %s209_s8  ;;  %p215_p13 = scmp.lt.s32.totalorder %s209_s8, %s209_s8 }
  0x1d   :  { %p216_p0 = por %p215_p13, %p214_p12 }
  0x1f   :  { %p217_p1 = pnand %p216_p0, %p210_p11 }
  0x21   :  { %220 = shalt.err (!%p217_p1)
}
  0x22   :  { %22 = dma.hbm_to_vmem [thread:$0]  %s363_s0, 128, %s299_s15, [#allocation3], %s273_s24, %s273_s24, %s274_s25  }
  0x23   :  { %s275_s10 = smov [#allocation7]   ;;  %s221_s14 = scalar_lea.hbm %s365_s2, 16 }
  0x24   :  { %s41_s11 = sshll.u32 %s275_s10, 4  ;;  %p222_p2 = scmp.ne.s32.totalorder %s365_s2, %s221_s14  ;;  %s42_s11 = int_to_ptr.vmem [resolvable:$true] %s41_s11 }
  0x25   :  { %p225_p3 = scmp.lt.u32.totalorder %s221_s14, %s365_s2 }
  0x27   :  { %p227_p4 = pnand %p225_p3, %p222_p2 }
  0x29   :  { %230 = shalt.err (!%p227_p4)
}
  0x2a   :  { %s231_s20 = scalar_lea.vmem %s42_s11, 16  ;;  %s235_s0 = scalar_lea.vmem %s42_s11, 32 }
  0x2b   :  { %p232_p5 = scmp.ne.s32.totalorder %s42_s11, %s231_s20  ;;  %p236_p6 = scmp.lt.s32.totalorder %s42_s11, %s42_s11 }
  0x2c   :  { %p237_p7 = scmp.lt.s32.totalorder %s235_s0, %s231_s20 }
  0x2e   :  { %p238_p8 = por %p237_p7, %p236_p6 }
  0x30   :  { %p239_p9 = pnand %p238_p8, %p232_p5 }
  0x32   :  { %242 = shalt.err (!%p239_p9)
}
  0x33   :  { %44 = dma.hbm_to_vmem [thread:$0]  %s365_s2, 16, %s42_s11, [#allocation6]  }
  0x34   :  { %265 = dma.done.wait [#allocation3], 128  }
  0x35   :  { %266 = vsyncadd [#allocation3], 4294967168 }
  0x36   :  { %267 = dma.done.wait [#allocation6], 144  }
  0x37   :  { %268 = vsyncadd [#allocation6], 4294967152  ;;  %v276_v0 = vmov 0.0   ;;  %vm277_vm0 = vmmov 0   ;;  %v175_v1 = vld [vmem:[#allocation5] sm:$0xff]   ;;  %v176_v2 = vld [vmem:[#allocation2] sm:$0xff]  }
  0x38   :  { %161 = vmatprep.subr.bf16.mxu0 %v276_v0  ;;  %163 = vmatprep.mubr.msk.bf16.mxu0 %vm277_vm0, %v276_v0  ;;  %vm77_vm1 = vcmask 130048   ;;  %v151_v3 = vld [vmem:[#allocation7] ss:$0 sm:$0xff]  ;;  %vm130_vm2 = vcmask 257024   ;;  %s278_s2 = smov [#allocation8]  }
  0x39   :  { %162 = vmatpush3.bf16.msra.mxu0 %v175_v1  ;;  %s138_s22 = sshll.u32 %s278_s2, 4  ;;  %s139_s22 = int_to_ptr.vmem [resolvable:$true] %s138_s22 }
  0x3a   :  { %s243_s23 = scalar_lea.vmem %s139_s22, 128  ;;  %p248_p11 = scmp.lt.s32.totalorder %s139_s22, %s139_s22 }
  0x3b   :  { %p244_p10 = scmp.ne.s32.totalorder %s139_s22, %s243_s23  ;;  %p249_p12 = scmp.lt.s32.totalorder %s243_s23, %s243_s23 }
  0x3c   :  { %164 = vmatmul.mubr.msk.bf16.vlgmr.msra.gmra.mrb[0].mxu0 %vm77_vm1, %v176_v2 }
  0x3d   :  { %p250_p13 = por %p249_p12, %p248_p11 }
  0x3f   :  { %p251_p0 = pnand %p250_p13, %p244_p10 }
 0x10f   :  { %v115_v4 = vpop.f32.mrb[0].mxu0 }
 0x110   :  { %v116_v5 = vadd.f32 %v151_v3, %v115_v4  ;;  %v165_v6 = vpop.f32.mrb[1].mxu0 }
 0x111   :  { %v118_v7 = vpop.f32.mrb[2].mxu0 }
 0x112   :  { %v157_v8 = vpack.c.bf16 %v116_v5, %v116_v5  ;;  %v119_v9 = vadd.f32 %v151_v3, %v118_v7  ;;  %v166_v10 = vpop.f32.mrb[3].mxu0 }
 0x114   :  { %v158_v11 = vpack.c.bf16 %v119_v9, %v119_v9  ;;  %131 = vst.msk [vmem:[#allocation8] sm:$0xf] %vm130_vm2, %v157_v8 }
 0x116   :  { %132 = vst.msk [vmem:[#allocation8 + $0x4] sm:$0xf] %vm130_vm2, %v158_v11 }
 0x117   :  { %254 = shalt.err (!%p251_p0)
}
 0x118   :  { %s255_s28 = scalar_lea.hbm %s366_s3, 128 }
 0x119   :  { %p256_p1 = scmp.ne.s32.totalorder %s366_s3, %s255_s28  ;;  %p259_p2 = scmp.lt.u32.totalorder %s255_s28, %s366_s3 }
 0x11b   :  { %p261_p3 = pnand %p259_p2, %p256_p1 }
 0x11d   :  { %264 = shalt.err (!%p261_p3)
}
 0x11e   :  { %144 = dma.vmem_to_hbm [thread:$0]  %s139_s22, 128, %s366_s3, [#allocation4], %s273_s24, %s273_s24, %s274_s25  }
 0x11f   :  { %269 = dma.done.wait [#allocation4], 128  }
 0x120   :  { %270 = vsyncadd [#allocation4], 4294967168 }
 0x121   :  { %148 = vsyncpa [#allocation3], 1 }
 0x122   :  { %149 = vsyncpa [#allocation6], 1 }
 0x123   :  { %150 = vsyncpa [#allocation4], 1 }

// kernel: resampler_forward.5
= control target key start
LH: loop header
LB: loop body
LE: loop exit
PB: predicated region body
PF: predicated region fallthrough
CT: control target
= control target key end

     0   :  { %10 = vsyncpa [#allocation3], 0  ;;  %s537_s0 = inlined_call_operand.hbm [shape: bf16[16,32], index: 0, kind: input, shape index: {}]   ;;  %s538_s1 = inlined_call_operand.hbm [shape: bf16[32,32], index: 1, kind: input, shape index: {}]   ;;  %s539_s2 = inlined_call_operand.hbm [shape: f32[1,32], index: 2, kind: input, shape index: {}]   ;;  %s540_s3 = inlined_call_operand.hbm [shape: f32[1,32], index: 3, kind: input, shape index: {}]   ;;  %s541_s4 = inlined_call_operand.hbm [shape: f32[1,32], index: 4, kind: input, shape index: {}]   ;;  %s542_s5 = inlined_call_operand.hbm [shape: f32[16,32], index: 5, kind: output, shape index: {}]  }
   0x1   :  { %11 = vsyncpa [#allocation6], 0 }
   0x2   :  { %12 = vsyncpa [#allocation9], 0 }
   0x3   :  { %13 = vsyncpa [#allocation4], 0  ;;  %s402_s18 = smov [#allocation5]   ;;  %s403_s20 = smov [#allocation8]  }
   0x4   :  { %s31_s19 = sshll.u32 %s402_s18, 4  ;;  %s54_s21 = sshll.u32 %s403_s20, 4  ;;  %s32_s19 = int_to_ptr.vmem [resolvable:$true] %s31_s19  ;;  %s444_s21 = int_to_ptr.vmem [resolvable:$true] %s54_s21 }
   0x5   :  { %s262_s24 = scalar_lea.hbm %s538_s1, 256 }
   0x6   :  { %p263_p0 = scmp.ne.s32.totalorder %s538_s1, %s262_s24  ;;  %p266_p1 = scmp.lt.u32.totalorder %s262_s24, %s538_s1 }
   0x8   :  { %p268_p2 = pnand %p266_p1, %p263_p0 }
   0xa   :  { %271 = shalt.err (!%p268_p2)
}
   0xb   :  { %s272_s29 = scalar_lea.vmem %s32_s19, 256  ;;  %p277_p4 = scmp.lt.s32.totalorder %s32_s19, %s32_s19 }
   0xc   :  { %p273_p3 = scmp.ne.s32.totalorder %s32_s19, %s272_s29  ;;  %p278_p5 = scmp.lt.s32.totalorder %s272_s29, %s272_s29 }
   0xe   :  { %p279_p6 = por %p278_p5, %p277_p4 }
  0x10   :  { %p280_p7 = pnand %p279_p6, %p273_p3 }
  0x12   :  { %283 = shalt.err (!%p280_p7)
}
  0x13   :  { %s404_s30 = smov 64   ;;  %s405_s6 = smov 4  }
  0x14   :  { %37 = dma.hbm_to_vmem [thread:$0]  %s538_s1, 256, %s32_s19, [#allocation6], %s404_s30, %s404_s30, %s405_s6  }
  0x15   :  { %s284_s11 = scalar_lea.hbm %s540_s3, 16 }
  0x16   :  { %p285_p8 = scmp.ne.s32.totalorder %s540_s3, %s284_s11  ;;  %p288_p9 = scmp.lt.u32.totalorder %s284_s11, %s540_s3 }
  0x18   :  { %p290_p10 = pnand %p288_p9, %p285_p8 }
  0x1a   :  { %293 = shalt.err (!%p290_p10)
}
  0x1b   :  { %s294_s16 = scalar_lea.vmem %s444_s21, 16  ;;  %s298_s1 = scalar_lea.vmem %s444_s21, 32 }
  0x1c   :  { %p295_p11 = scmp.ne.s32.totalorder %s444_s21, %s294_s16  ;;  %p299_p12 = scmp.lt.s32.totalorder %s444_s21, %s444_s21 }
  0x1d   :  { %p300_p13 = scmp.lt.s32.totalorder %s298_s1, %s294_s16 }
  0x1f   :  { %p301_p0 = por %p300_p13, %p299_p12 }
  0x21   :  { %p302_p1 = pnand %p301_p0, %p295_p11 }
  0x23   :  { %305 = shalt.err (!%p302_p1)
}
  0x24   :  { %57 = dma.hbm_to_vmem [thread:$0]  %s540_s3, 16, %s444_s21, [#allocation9]  }
  0x25   :  { %s406_s19 = smov [#allocation2]   ;;  %s407_s22 = smov [#allocation7]  }
  0x26   :  { %s19_s20 = sshll.u32 %s406_s19, 4  ;;  %s44_s23 = sshll.u32 %s407_s22, 4  ;;  %s20_s20 = int_to_ptr.vmem [resolvable:$true] %s19_s20  ;;  %s45_s23 = int_to_ptr.vmem [resolvable:$true] %s44_s23 }
  0x27   :  { %s306_s26 = scalar_lea.hbm %s537_s0, 128 }
  0x28   :  { %p307_p2 = scmp.ne.s32.totalorder %s537_s0, %s306_s26  ;;  %p310_p3 = scmp.lt.u32.totalorder %s306_s26, %s537_s0 }
  0x2a   :  { %p312_p4 = pnand %p310_p3, %p307_p2 }
  0x2c   :  { %315 = shalt.err (!%p312_p4)
}
  0x2d   :  { %s316_s3 = scalar_lea.vmem %s20_s20, 128  ;;  %p321_p6 = scmp.lt.s32.totalorder %s20_s20, %s20_s20 }
  0x2e   :  { %p317_p5 = scmp.ne.s32.totalorder %s20_s20, %s316_s3  ;;  %p322_p7 = scmp.lt.s32.totalorder %s316_s3, %s316_s3 }
  0x30   :  { %p323_p8 = por %p322_p7, %p321_p6 }
  0x32   :  { %p324_p9 = pnand %p323_p8, %p317_p5 }
  0x34   :  { %327 = shalt.err (!%p324_p9)
}
  0x35   :  { %25 = dma.hbm_to_vmem [thread:$0]  %s537_s0, 128, %s20_s20, [#allocation3], %s404_s30, %s404_s30, %s405_s6  }
  0x36   :  { %s328_s11 = scalar_lea.hbm %s539_s2, 16 }
  0x37   :  { %p329_p10 = scmp.ne.s32.totalorder %s539_s2, %s328_s11  ;;  %p332_p11 = scmp.lt.u32.totalorder %s328_s11, %s539_s2 }
  0x39   :  { %p334_p12 = pnand %p332_p11, %p329_p10 }
  0x3b   :  { %337 = shalt.err (!%p334_p12)
}
  0x3c   :  { %s338_s16 = scalar_lea.vmem %s45_s23, 16  ;;  %s342_s1 = scalar_lea.vmem %s45_s23, 32 }
  0x3d   :  { %p339_p13 = scmp.ne.s32.totalorder %s45_s23, %s338_s16  ;;  %p343_p0 = scmp.lt.s32.totalorder %s45_s23, %s45_s23 }
  0x3e   :  { %p344_p1 = scmp.lt.s32.totalorder %s342_s1, %s338_s16 }
  0x40   :  { %p345_p2 = por %p344_p1, %p343_p0 }
  0x42   :  { %p346_p3 = pnand %p345_p2, %p339_p13 }
  0x44   :  { %349 = shalt.err (!%p346_p3)
}
  0x45   :  { %47 = dma.hbm_to_vmem [thread:$0]  %s539_s2, 16, %s45_s23, [#allocation6]  }
  0x46   :  { %s408_s6 = smov [#allocation10]   ;;  %s350_s20 = scalar_lea.hbm %s541_s4, 16 }
  0x47   :  { %s64_s17 = sshll.u32 %s408_s6, 4  ;;  %p351_p4 = scmp.ne.s32.totalorder %s541_s4, %s350_s20  ;;  %s65_s17 = int_to_ptr.vmem [resolvable:$true] %s64_s17 }
  0x48   :  { %p354_p5 = scmp.lt.u32.totalorder %s350_s20, %s541_s4 }
  0x4a   :  { %p356_p6 = pnand %p354_p5, %p351_p4 }
  0x4c   :  { %359 = shalt.err (!%p356_p6)
}
  0x4d   :  { %s360_s27 = scalar_lea.vmem %s65_s17, 16  ;;  %s364_s2 = scalar_lea.vmem %s65_s17, 32 }
  0x4e   :  { %p361_p7 = scmp.ne.s32.totalorder %s65_s17, %s360_s27  ;;  %p365_p8 = scmp.lt.s32.totalorder %s65_s17, %s65_s17 }
  0x4f   :  { %p366_p9 = scmp.lt.s32.totalorder %s364_s2, %s360_s27 }
  0x51   :  { %p367_p10 = por %p366_p9, %p365_p8 }
  0x53   :  { %p368_p11 = pnand %p367_p10, %p361_p7 }
  0x55   :  { %371 = shalt.err (!%p368_p11)
}
  0x56   :  { %67 = dma.hbm_to_vmem [thread:$0]  %s541_s4, 16, %s65_s17, [#allocation9]  }
  0x57   :  { %394 = dma.done.wait [#allocation3], 128  }
  0x58   :  { %395 = vsyncadd [#allocation3], 4294967168 }
  0x59   :  { %396 = dma.done.wait [#allocation6], 272  }
  0x5a   :  { %397 = vsyncadd [#allocation6], 4294967024 }
  0x5b   :  { %398 = dma.done.wait [#allocation9], 32  }
  0x5c   :  { %399 = vsyncadd [#allocation9], 4294967264  ;;  %v409_v0 = vmov 0.0   ;;  %vm410_vm0 = vmmov 0   ;;  %v255_v1 = vld [vmem:[#allocation5] sm:$0xff]   ;;  %v256_v2 = vld [vmem:[#allocation5 + $0x8] sm:$0xff]  }
  0x5d   :  { %235 = vmatprep.subr.bf16.mxu0 %v409_v0  ;;  %239 = vmatprep.mubr.msk.bf16.mxu0 %vm410_vm0, %v409_v0  ;;  %v257_v3 = vld [vmem:[#allocation2] sm:$0xff]   ;;  %vm114_vm1 = vcmask 261120   ;;  %v225_v4 = vld [vmem:[#allocation7] ss:$0 sm:$0xff]  ;;  %v230_v30 = vld [vmem:[#allocation8] ss:$0 sm:$0xff] }
  0x5e   :  { %236 = vmatpush3.bf16.msra.mxu0 %v255_v1  ;;  %v231_v32 = vld [vmem:[#allocation10] ss:$0 sm:$0xff]  ;;  %s411_s4 = smov [#allocation11]  }
  0x5f   :  { %237 = vmatprep.subr.bf16.mxu0 %v409_v0  ;;  %s211_s29 = sshll.u32 %s411_s4, 4  ;;  %s212_s29 = int_to_ptr.vmem [resolvable:$true] %s211_s29 }
  0x60   :  { %s372_s7 = scalar_lea.vmem %s212_s29, 256  ;;  %p377_p13 = scmp.lt.s32.totalorder %s212_s29, %s212_s29 }
  0x61   :  { %p373_p12 = scmp.ne.s32.totalorder %s212_s29, %s372_s7  ;;  %p378_p0 = scmp.lt.s32.totalorder %s372_s7, %s372_s7 }
  0x62   :  { %238 = vmatpush3.bf16.msra.mxu0 %v256_v2 }
  0x63   :  { %p379_p1 = por %p378_p0, %p377_p13 }
  0x65   :  { %240 = vmatmul.mubr.msk.bf16.vlgmr.msra.gmra.mrb[0].mxu0 %vm114_vm1, %v257_v3  ;;  %p380_p2 = pnand %p379_p1, %p373_p12 }
 0x138   :  { %v152_v5 = vpop.f32.mrb[0].mxu0 }
 0x139   :  { %v153_v6 = vadd.f32 %v225_v4, %v152_v5  ;;  %v241_v7 = vpop.f32.mrb[1].mxu0 }
 0x13a   :  { %v155_v8 = vpop.f32.mrb[2].mxu0 }
 0x13b   :  { %v156_v9 = vadd.f32 %v225_v4, %v155_v8  ;;  %v242_v10 = vpop.f32.mrb[3].mxu0  ;;  %v161_v11 = vsel %vm114_vm1, %v153_v6, 0.0 }
 0x13c   :  { %162 = vadd.xlane.f32.xlu0 %v161_v11 }
 0x13d   :  { %v164_v12 = vsel %vm114_vm1, %v156_v9, 0.0 }
 0x140   :  { %165 = vadd.xlane.f32.xlu0 %v164_v12 }
 0x1c9   :  { %v163_v13 = vpop.xlane.xlu0 %162 }
 0x1ca   :  { %v168_v14 = vmul.f32 0.03125, %v163_v13 }
 0x1cc   :  { %v170_v15 = vsub.f32 %v153_v6, %v168_v14 }
 0x1cd   :  { %v166_v16 = vpop.xlane.xlu0 %165 }
 0x1ce   :  { %v169_v17 = vmul.f32 0.03125, %v166_v16  ;;  %v172_v18 = vmul.f32 %v170_v15, %v170_v15 }
 0x1d0   :  { %v171_v19 = vsub.f32 %v156_v9, %v169_v17  ;;  %v174_v20 = vsel %vm114_vm1, %v172_v18, 0.0 }
 0x1d1   :  { %175 = vadd.xlane.f32.xlu1 %v174_v20 }
 0x1d2   :  { %v173_v21 = vmul.f32 %v171_v19, %v171_v19 }
 0x1d4   :  { %v177_v22 = vsel %vm114_vm1, %v173_v21, 0.0 }
 0x1d5   :  { %178 = vadd.xlane.f32.xlu1 %v177_v22 }
 0x25e   :  { %v176_v23 = vpop.xlane.xlu1 %175 }
 0x25f   :  { %v180_v24 = vmul.f32 0.03125, %v176_v23 }
 0x261   :  { %v182_v25 = vadd.f32 1e-05, %v180_v24 }
 0x262   :  { %v179_v26 = vpop.xlane.xlu1 %178 }
 0x263   :  { %258 = vrsqrt.f32 %v182_v25  ;;  %v181_v27 = vmul.f32 0.03125, %v179_v26 }
 0x265   :  { %v183_v28 = vadd.f32 1e-05, %v181_v27 }
 0x267   :  { %260 = vrsqrt.f32 %v183_v28 }
 0x26d   :  { %v259_v29 = vpop.eup %258 }
 0x26e   :  { %v186_v31 = vmul.f32 %v259_v29, %v170_v15 }
 0x270   :  { %v194_v33 = vmul.f32 %v230_v30, %v186_v31 }
 0x271   :  { %v261_v34 = vpop.eup %260 }
 0x272   :  { %v187_v35 = vmul.f32 %v261_v34, %v171_v19  ;;  %v202_v36 = vadd.f32 %v231_v32, %v194_v33 }
 0x274   :  { %v195_v37 = vmul.f32 %v230_v30, %v187_v35  ;;  %204 = vst.msk [vmem:[#allocation11] sm:$0xff] %vm114_vm1, %v202_v36 }
 0x276   :  { %v203_v38 = vadd.f32 %v231_v32, %v195_v37 }
 0x278   :  { %205 = vst.msk [vmem:[#allocation11 + $0x8] sm:$0xff] %vm114_vm1, %v203_v38 }
 0x279   :  { %383 = shalt.err (!%p380_p2)
}
 0x27a   :  { %s384_s8 = scalar_lea.hbm %s542_s5, 256 }
 0x27b   :  { %p385_p3 = scmp.ne.s32.totalorder %s542_s5, %s384_s8  ;;  %p388_p4 = scmp.lt.u32.totalorder %s384_s8, %s542_s5 }
 0x27d   :  { %p390_p5 = pnand %p388_p4, %p385_p3 }
 0x27f   :  { %393 = shalt.err (!%p390_p5)
}
 0x280   :  { %s412_s13 = smov 128   ;;  %s413_s14 = smov 8  }
 0x281   :  { %217 = dma.vmem_to_hbm [thread:$0]  %s212_s29, 256, %s542_s5, [#allocation4], %s412_s13, %s412_s13, %s413_s14  }
 0x282   :  { %400 = dma.done.wait [#allocation4], 256  }
 0x283   :  { %401 = vsyncadd [#allocation4], 4294967040 }
 0x284   :  { %221 = vsyncpa [#allocation3], 1 }
 0x285   :  { %222 = vsyncpa [#allocation6], 1 }
 0x286   :  { %223 = vsyncpa [#allocation9], 1 }
 0x287   :  { %224 = vsyncpa [#allocation4], 1 }

// kernel: resampler_forward.4
= control target key start
LH: loop header
LB: loop body
LE: loop exit
PB: predicated region body
PF: predicated region fallthrough
CT: control target
= control target key end

     0   :  { %s3821_s0 = inlined_call_operand.hbm [shape: f32[16,32], index: 0, kind: input, shape index: {}]   ;;  %s3822_s1 = inlined_call_operand.hbm [shape: bf16[16,32], index: 1, kind: input, shape index: {}]   ;;  %s3823_s2 = inlined_call_operand.hbm [shape: s32[32,1], index: 2, kind: input, shape index: {}]   ;;  %s3824_s3 = inlined_call_operand.hbm [shape: s32[1,32], index: 3, kind: input, shape index: {}]   ;;  %s3825_s4 = inlined_call_operand.hbm [shape: bf16[2,32,32], index: 4, kind: input, shape index: {}]   ;;  %s3826_s5 = inlined_call_operand.hbm [shape: bf16[2,32,64], index: 5, kind: input, shape index: {}]   ;;  %s3827_s6 = inlined_call_operand.hbm [shape: bf16[2,32,32], index: 6, kind: input, shape index: {}]   ;;  %s3828_s7 = inlined_call_operand.hbm [shape: f32[2,1,32], index: 7, kind: input, shape index: {}]   ;;  %s3829_s8 = inlined_call_operand.hbm [shape: f32[2,1,32], index: 8, kind: input, shape index: {}]   ;;  %s3830_s9 = inlined_call_operand.hbm [shape: bf16[2,32,128], index: 9, kind: input, shape index: {}]   ;;  %s3831_s10 = inlined_call_operand.hbm [shape: bf16[2,128,32], index: 10, kind: input, shape index: {}]   ;;  %s3832_s11 = inlined_call_operand.hbm [shape: bf16[16,32], index: 11, kind: output, shape index: {}]  }
   0x1   :  { %3860 = sst [smem:[#allocation31_spill]] %s3821_s0 }
   0x2   :  { %3861 = sst [smem:[#allocation32_spill]] %s3824_s3 }
   0x3   :  { %3862 = sst [smem:[#allocation33_spill]] %s3825_s4 }
   0x4   :  { %3863 = sst [smem:[#allocation34_spill]] %s3831_s10 }
   0x5   :  { %3864 = sst [smem:[#allocation35_spill]] %s3832_s11 }
   0x6   :  { %16 = vsyncpa [#allocation4], 0 }
   0x7   :  { %17 = vsyncpa [#allocation7], 0 }
   0x8   :  { %18 = vsyncpa [#allocation10], 0 }
   0x9   :  { %19 = vsyncpa [#allocation5], 0  ;;  %s3083_s17 = smov 0   ;;  %s3085_s18 = smov 0  }
   0xa   :  { %s3087_s19 = smov 0   ;;  %s3089_s20 = smov 0  }
   0xb LB: > { %3865 = sst [smem:[#allocation24_spill]] %s2991_s18  ;;  %s3102_s21 = sadd.s32 4294967295, %s2999_s20   ;;  %s2999_s20 = sphi %s3089_s20, %s3912_s20   ;;  %s2995_s19 = sphi %s3087_s19, %s3915_s19   ;;  %s2991_s18 = sphi %s3085_s18, %s3914_s18   ;;  %s2987_s17 = sphi %s3083_s17, %s3913_s17  }
   0xc   : > { %3866 = sst [smem:[#allocation25_spill]] %s2995_s19  ;;  %s3105_s22 = sadd.s32 1, %s2999_s20  }
   0xd   : > { %3867 = sst [smem:[#allocation26_spill]] %s3102_s21  ;;  %s113_s23 = ssub.s32 %s2999_s20, %s3105_s22 }
   0xe   : > { %3868 = sst [smem:[#allocation27_spill]] %s3105_s22  ;;  %s116_s24 = sadd.s32 1, %s2995_s19 }
   0xf   : > { %p114_p0 = scmp.eq.s32.totalorder %s113_s23, 0  ;;  %p123_p1 = scmp.ne.s32.totalorder %s2995_s19, %s2991_s18 }
  0x10   : > { %p124_p2 = scmp.eq.s32.totalorder %s2999_s20, 0  ;;  %p129_p3 = scmp.ne.s32.totalorder %s2991_s18, %s2987_s17 }
  0x11   : > { %s3115_s25 = scalar_select %p114_p0, %s2995_s19, %s116_s24  }
  0x12   : > { %p3117_p4 = por %p124_p2, %p123_p1  ;;  %p3833_p5 = scmp.eq.s32.totalorder %s3102_s21, 0 }
  0x13   : > { %3869 = sst [smem:[#allocation28_spill]] %s3115_s25  ;;  %p2130_p6 = scmp.ge.s32.totalorder %s2999_s20, 1 }
  0x14   : > { %p317_p7 = scmp.lt.s32.totalorder %s2999_s20, 3  ;;  %p3126_p8 = por %p3833_p5, %p129_p3 }
  0x15   : > { %s3001_s29 = smov [#allocation3]   ;;  %p2468_p13 = scmp.lt.s32.totalorder %s2999_s20, 2 }
  0x16   : > { %s3871_s27 = scalar_select %p3126_p8, 1, 0 }
  0x17   : > { %p3131_p10 = pnand %p2130_p6, %p317_p7  ;;  %s329_s30 = sshll.u32 %s3001_s29, 4  ;;  %s330_s30 = int_to_ptr.vmem [resolvable:$true] %s329_s30 }
  0x18   : > { %3872 = sst [smem:[#allocation29_spill]] %s3871_s27  ;;  %p3146_p0 = pnand %p2468_p13, %p3117_p4 }
  0x19   : > { %s3873_s28 = scalar_select %p3131_p10, 1, 0 }
  0x1a   : > { %p2429_p11 = pneg %p3131_p10  ;;  %s3877_s0 = sld [smem:[#allocation31_spill]] }
  0x1b   : > { %3874 = sst [smem:[#allocation30_spill]] %s3873_s28 }
  0x1c   : > { %p3139_p12 = pnand %p2429_p11, %p3833_p5 }
  0x1d   : > { %s3876_s13 = scalar_select %p3146_p0, 1, 0 }
  0x1e   : > { %s3875_s12 = scalar_select %p3139_p12, 1, 0 }
  0x1f   : > { %p3158_p2 = pneg %p3139_p12 }
  0x20   : > { %s2601_s16 = scalar_lea.hbm %s3877_s0, 256 }
  0x21   : > { %p2602_p1 = scmp.ne.s32.totalorder %s3877_s0, %s2601_s16  ;;  %p2608_p6 = scmp.lt.u32.totalorder %s2601_s16, %s3877_s0 }
  0x22   : > { %s3878_s24 = scalar_select %p3158_p2, 1, 0 }
  0x23   : > { %p2604_p3 = pnand %p3158_p2, %p2602_p1 }
  0x25   : > { %p2605_p4 = pneg %p2604_p3 }
  0x27   : > { %p2610_p7 = pnand %p2608_p6, %p2605_p4 }
  0x29   : > { %2613 = shalt.err (!%p2610_p7)
}
  0x2a   : > { %s2614_s14 = scalar_lea.vmem %s330_s30, 256  ;;  %p2622_p5 = scmp.lt.s32.totalorder %s330_s30, %s330_s30 }
  0x2b   : > { %p2615_p11 = scmp.ne.s32.totalorder %s330_s30, %s2614_s14  ;;  %p2623_p8 = scmp.lt.s32.totalorder %s2614_s14, %s2614_s14 }
  0x2d   : > { %p2617_p13 = pnand %p2615_p11, %p3158_p2  ;;  %p2624_p10 = por %p2623_p8, %p2622_p5 }
  0x2f   : > { %p2618_p9 = pneg %p2617_p13 }
  0x31   : > { %p2625_p0 = pnand %p2624_p10, %p2618_p9 }
  0x33   : > { %2628 = shalt.err (!%p2625_p0)
}
  0x34   : > { %s3842_s15 = smov 128   ;;  %s3843_s16 = smov 8  }
  0x35   : > { %2432 = dma.hbm_to_vmem [thread:$0]  (!%p3139_p12), %s3877_s0, 256, %s330_s30, [#allocation4], %s3842_s15, %s3842_s15, %s3843_s16  }
  0x36   : > { %s380_s26 = sand.u32 1, %s2999_s20   ;;  %s3179_s29 = sand.u32 1, %s2995_s19  }
  0x37   : > { %s3182_s14 = sshll.u32 %s3179_s29, 4  ;;  %s3185_s25 = sshll.u32 %s2999_s20, 8 }
  0x38   : > { %s3879_s4 = sld [smem:[#allocation33_spill]]  ;;  %s384_s30 = scalar_lea.vmem [#allocation11], %s3182_s14 }
  0x39   : > { %s391_s17 = sshll.u32 %s384_s30, 4  ;;  %s3200_s16 = scalar_lea.hbm %s3826_s5, %s3185_s25  ;;  %s3194_s17 = int_to_ptr.vmem [resolvable:$true] %s391_s17 }
  0x3a   : > { %s3202_s0 = scalar_lea.sflag [#allocation4], %s380_s26  ;;  %p3880_p8 = scmp.ne.s32.totalorder %s3876_s13, 0 }
  0x3c   : > { %p3208_p9 = pneg %p3880_p8 }
  0x3e   : > { %s3191_s27 = scalar_lea.hbm %s3879_s4, %s3185_s25  ;;  %s2634_s18 = scalar_lea.hbm %s3879_s4, 512 }
  0x3f   : > { %s2629_s19 = scalar_lea.hbm %s3191_s27, 256  ;;  %p2635_p1 = scmp.lt.u32.totalorder %s3191_s27, %s3879_s4 }
  0x40   : > { %p2630_p5 = scmp.ne.s32.totalorder %s3191_s27, %s2629_s19  ;;  %p2636_p3 = scmp.lt.u32.totalorder %s2634_s18, %s2629_s19 }
  0x41   : > { %s3881_s11 = scalar_select %p3208_p9, 1, 0 }
  0x42   : > { %p2632_p10 = pnand %p3208_p9, %p2630_p5  ;;  %p2637_p4 = por %p2636_p3, %p2635_p1 }
  0x43   : > { %p2638_p6 = scmp.lt.u32.totalorder %s2629_s19, %s3191_s27 }
  0x44   : > { %p2633_p0 = pneg %p2632_p10 }
  0x45   : > { %p2639_p7 = por %p2638_p6, %p2637_p4 }
  0x47   : > { %p2640_p11 = pnand %p2639_p7, %p2633_p0 }
  0x49   : > { %2643 = shalt.err (!%p2640_p11)
}
  0x4a   : > { %s2644_s26 = scalar_lea.vmem %s3194_s17, 256  ;;  %s3004_s22 = smov [#allocation11]  }
  0x4b   : > { %p2645_p13 = scmp.ne.s32.totalorder %s3194_s17, %s2644_s26  ;;  %s2649_s30 = sshll.u32 %s3004_s22, 4  ;;  %s2650_s30 = int_to_ptr.vmem [resolvable:$false] %s2649_s30 }
  0x4c   : > { %s2651_s15 = scalar_lea.vmem %s2650_s30, 512  ;;  %p2652_p12 = scmp.lt.s32.totalorder %s3194_s17, %s2650_s30 }
  0x4d   : > { %p2647_p5 = pnand %p2645_p13, %p3208_p9  ;;  %p2653_p2 = scmp.lt.s32.totalorder %s2651_s15, %s2644_s26 }
  0x4f   : > { %p2648_p10 = pneg %p2647_p5  ;;  %p2654_p1 = por %p2653_p2, %p2652_p12 }
  0x51   : > { %p2655_p3 = pnand %p2654_p1, %p2648_p10 }
  0x53   : > { %2658 = shalt.err (!%p2655_p3)
}
  0x54   : > { %s3857_s18 = smov 64   ;;  %s3006_s19 = smov 4  }
  0x55   : > { %2445 = dma.hbm_to_vmem [thread:$0]  (!%p3880_p8), %s3191_s27, 256, %s3194_s17, %s3202_s0, %s3857_s18, %s3857_s18, %s3006_s19  }
  0x56   : > { %s405_s23 = scalar_lea.vmem [#allocation12], %s3182_s14  ;;  %s3242_s15 = scalar_lea.hbm %s3827_s6, %s3185_s25 }
  0x57   : > { %s412_s26 = sshll.u32 %s405_s23, 4  ;;  %s2659_s4 = scalar_lea.hbm %s3200_s16, 256  ;;  %s3236_s26 = int_to_ptr.vmem [resolvable:$true] %s412_s26 }
  0x58   : > { %p2660_p12 = scmp.ne.s32.totalorder %s3200_s16, %s2659_s4  ;;  %s2664_s10 = scalar_lea.hbm %s3826_s5, 512 }
  0x59   : > { %p2665_p4 = scmp.lt.u32.totalorder %s3200_s16, %s3826_s5  ;;  %p2666_p6 = scmp.lt.u32.totalorder %s2664_s10, %s2659_s4 }
  0x5a   : > { %p2662_p2 = pnand %p2660_p12, %p3208_p9  ;;  %p2668_p11 = scmp.lt.u32.totalorder %s2659_s4, %s3200_s16 }
  0x5b   : > { %p2667_p7 = por %p2666_p6, %p2665_p4 }
  0x5c   : > { %p2663_p0 = pneg %p2662_p2 }
  0x5d   : > { %p2669_p13 = por %p2668_p11, %p2667_p7 }
  0x5f   : > { %p2670_p5 = pnand %p2669_p13, %p2663_p0 }
  0x61   : > { %2673 = shalt.err (!%p2670_p5)
}
  0x62   : > { %s2674_s17 = scalar_lea.vmem %s3236_s26, 256  ;;  %s3007_s21 = smov [#allocation12]  }
  0x63   : > { %p2675_p10 = scmp.ne.s32.totalorder %s3236_s26, %s2674_s17  ;;  %s2679_s28 = sshll.u32 %s3007_s21, 4  ;;  %s2680_s28 = int_to_ptr.vmem [resolvable:$false] %s2679_s28 }
  0x64   : > { %s2681_s3 = scalar_lea.vmem %s2680_s28, 512  ;;  %p2682_p12 = scmp.lt.s32.totalorder %s3236_s26, %s2680_s28 }
  0x65   : > { %p2677_p1 = pnand %p2675_p10, %p3208_p9  ;;  %p2683_p2 = scmp.lt.s32.totalorder %s2681_s3, %s2674_s17 }
  0x67   : > { %p2678_p3 = pneg %p2677_p1  ;;  %p2684_p4 = por %p2683_p2, %p2682_p12 }
  0x69   : > { %p2685_p6 = pnand %p2684_p4, %p2678_p3 }
  0x6b   : > { %2688 = shalt.err (!%p2685_p6)
}
  0x6c   : > { %2448 = dma.hbm_to_vmem [thread:$0]  (!%p3880_p8), %s3200_s16, 256, %s3236_s26, %s3202_s0, %s3857_s18, %s3857_s18, %s3006_s19  }
  0x6d   : > { %s426_s4 = scalar_lea.vmem [#allocation13], %s3182_s14  ;;  %s2145_s23 = sshll.u32 %s2999_s20, 4 }
  0x6e   : > { %s433_s10 = sshll.u32 %s426_s4, 4  ;;  %s2689_s22 = scalar_lea.hbm %s3242_s15, 256  ;;  %s3270_s10 = int_to_ptr.vmem [resolvable:$true] %s433_s10 }
  0x6f   : > { %p2690_p0 = scmp.ne.s32.totalorder %s3242_s15, %s2689_s22  ;;  %s2694_s17 = scalar_lea.hbm %s3827_s6, 512 }
  0x70   : > { %p2695_p13 = scmp.lt.u32.totalorder %s3242_s15, %s3827_s6  ;;  %p2696_p5 = scmp.lt.u32.totalorder %s2694_s17, %s2689_s22 }
  0x71   : > { %p2692_p7 = pnand %p2690_p0, %p3208_p9  ;;  %p2698_p1 = scmp.lt.u32.totalorder %s2689_s22, %s3242_s15 }
  0x72   : > { %p2697_p10 = por %p2696_p5, %p2695_p13 }
  0x73   : > { %p2693_p11 = pneg %p2692_p7 }
  0x74   : > { %p2699_p3 = por %p2698_p1, %p2697_p10 }
  0x76   : > { %p2700_p12 = pnand %p2699_p3, %p2693_p11 }
  0x78   : > { %2703 = shalt.err (!%p2700_p12)
}
  0x79   : > { %s2704_s16 = scalar_lea.vmem %s3270_s10, 256  ;;  %s3008_s26 = smov [#allocation13]  }
  0x7a   : > { %p2705_p2 = scmp.ne.s32.totalorder %s3270_s10, %s2704_s16  ;;  %s2709_s3 = sshll.u32 %s3008_s26, 4  ;;  %s2710_s3 = int_to_ptr.vmem [resolvable:$false] %s2709_s3 }
  0x7b   : > { %s2711_s4 = scalar_lea.vmem %s2710_s3, 512  ;;  %p2712_p0 = scmp.lt.s32.totalorder %s3270_s10, %s2710_s3 }
  0x7c   : > { %p2707_p4 = pnand %p2705_p2, %p3208_p9  ;;  %p2713_p7 = scmp.lt.s32.totalorder %s2711_s4, %s2704_s16 }
  0x7e   : > { %p2708_p6 = pneg %p2707_p4  ;;  %p2714_p13 = por %p2713_p7, %p2712_p0 }
  0x80   : > { %p2715_p5 = pnand %p2714_p13, %p2708_p6 }
  0x82   : > { %2718 = shalt.err (!%p2715_p5)
}
  0x83   : > { %2451 = dma.hbm_to_vmem [thread:$0]  (!%p3880_p8), %s3242_s15, 256, %s3270_s10, %s3202_s0, %s3857_s18, %s3857_s18, %s3006_s19  }
  0x84   : > { %s3303_s27 = scalar_lea.hbm %s3828_s7, %s2145_s23  ;;  %s446_s17 = scalar_lea.vmem [#allocation14], %s3179_s29 }
  0x85   : > { %s453_s21 = sshll.u32 %s446_s17, 4  ;;  %s2719_s28 = scalar_lea.hbm %s3303_s27, 16  ;;  %s454_s21 = int_to_ptr.vmem [resolvable:$true] %s453_s21 }
  0x86   : > { %p2720_p11 = scmp.ne.s32.totalorder %s3303_s27, %s2719_s28  ;;  %s2724_s10 = scalar_lea.hbm %s3828_s7, 32 }
  0x87   : > { %p2725_p3 = scmp.lt.u32.totalorder %s3303_s27, %s3828_s7  ;;  %p2726_p12 = scmp.lt.u32.totalorder %s2724_s10, %s2719_s28 }
  0x88   : > { %p2722_p10 = pnand %p2720_p11, %p3208_p9  ;;  %p2728_p4 = scmp.lt.u32.totalorder %s2719_s28, %s3303_s27 }
  0x89   : > { %p2727_p2 = por %p2726_p12, %p2725_p3 }
  0x8a   : > { %p2723_p1 = pneg %p2722_p10 }
  0x8b   : > { %p2729_p6 = por %p2728_p4, %p2727_p2 }
  0x8d   : > { %p2730_p0 = pnand %p2729_p6, %p2723_p1 }
  0x8f   : > { %2733 = shalt.err (!%p2730_p0)
}
  0x90   : > { %s2734_s4 = scalar_lea.vmem %s454_s21, 16  ;;  %s3009_s22 = smov [#allocation14]  }
  0x91   : > { %p2735_p7 = scmp.ne.s32.totalorder %s454_s21, %s2734_s4  ;;  %s2739_s30 = sshll.u32 %s3009_s22, 4  ;;  %s2740_s30 = int_to_ptr.vmem [resolvable:$false] %s2739_s30 }
  0x92   : > { %s2741_s17 = scalar_lea.vmem %s2740_s30, 32  ;;  %p2742_p11 = scmp.lt.s32.totalorder %s454_s21, %s2740_s30 }
  0x93   : > { %p2737_p13 = pnand %p2735_p7, %p3208_p9  ;;  %p2743_p10 = scmp.lt.s32.totalorder %s2741_s17, %s2734_s4 }
  0x95   : > { %p2738_p5 = pneg %p2737_p13  ;;  %p2744_p8 = por %p2743_p10, %p2742_p11 }
  0x97   : > { %p2745_p3 = pnand %p2744_p8, %p2738_p5 }
  0x99   : > { %2748 = shalt.err (!%p2745_p3)
}
  0x9a   : > { %p3882_p12 = scmp.ne.s32.totalorder %s3876_s13, 0  ;;  %s3329_s15 = scalar_lea.hbm %s3829_s8, %s2145_s23 }
  0x9b   : > { %s463_s10 = scalar_lea.vmem [#allocation15], %s3179_s29  ;;  %s2749_s3 = scalar_lea.hbm %s3329_s15, 16 }
  0x9c   : > { %2454 = dma.hbm_to_vmem [thread:$0]  (!%p3882_p12), %s3303_s27, 16, %s454_s21, %s3202_s0  }
  0x9d   : > { %s470_s26 = sshll.u32 %s463_s10, 4  ;;  %p2750_p8 = scmp.ne.s32.totalorder %s3329_s15, %s2749_s3  ;;  %s471_s26 = int_to_ptr.vmem [resolvable:$true] %s470_s26 }
  0x9e   : > { %s2754_s21 = scalar_lea.hbm %s3829_s8, 32  ;;  %p2755_p4 = scmp.lt.u32.totalorder %s3329_s15, %s3829_s8 }
  0x9f   : > { %p2752_p1 = pnand %p2750_p8, %p3208_p9  ;;  %p2756_p6 = scmp.lt.u32.totalorder %s2754_s21, %s2749_s3 }
  0xa0   : > { %p2758_p7 = scmp.lt.u32.totalorder %s2749_s3, %s3329_s15 }
  0xa1   : > { %p2753_p2 = pneg %p2752_p1  ;;  %p2757_p0 = por %p2756_p6, %p2755_p4 }
  0xa3   : > { %p2759_p13 = por %p2758_p7, %p2757_p0 }
  0xa5   : > { %p2760_p5 = pnand %p2759_p13, %p2753_p2 }
  0xa7   : > { %2763 = shalt.err (!%p2760_p5)
}
  0xa8   : > { %s2764_s23 = scalar_lea.vmem %s471_s26, 16  ;;  %s3010_s17 = smov [#allocation15]  }
  0xa9   : > { %p2765_p11 = scmp.ne.s32.totalorder %s471_s26, %s2764_s23  ;;  %s2769_s28 = sshll.u32 %s3010_s17, 4  ;;  %s2770_s28 = int_to_ptr.vmem [resolvable:$false] %s2769_s28 }
  0xaa   : > { %s2771_s16 = scalar_lea.vmem %s2770_s28, 32  ;;  %p2772_p8 = scmp.lt.s32.totalorder %s471_s26, %s2770_s28 }
  0xab   : > { %p2767_p10 = pnand %p2765_p11, %p3208_p9  ;;  %p2773_p1 = scmp.lt.s32.totalorder %s2771_s16, %s2764_s23 }
  0xad   : > { %p2768_p3 = pneg %p2767_p10  ;;  %p2774_p12 = por %p2773_p1, %p2772_p8 }
  0xaf   : > { %p2775_p4 = pnand %p2774_p12, %p2768_p3 }
  0xb1   : > { %2778 = shalt.err (!%p2775_p4)
}
  0xb2   : > { %p3883_p6 = scmp.ne.s32.totalorder %s3876_s13, 0  ;;  %s3011_s10 = smov [#allocation6]  }
  0xb3   : > { %s342_s3 = sshll.u32 %s3011_s10, 4  ;;  %s3354_s21 = scalar_lea.hbm %s3830_s9, %s3185_s25  ;;  %s343_s3 = int_to_ptr.vmem [resolvable:$true] %s342_s3 }
  0xb4   : > { %2457 = dma.hbm_to_vmem [thread:$0]  (!%p3883_p6), %s3329_s15, 16, %s471_s26, %s3202_s0  }
  0xb5   : > { %s2779_s23 = scalar_lea.hbm %s3822_s1, 128  ;;  %p3884_p2 = scmp.ne.s32.totalorder %s3878_s24, 0 }
  0xb6   : > { %p2780_p12 = scmp.ne.s32.totalorder %s3822_s1, %s2779_s23  ;;  %p2786_p13 = scmp.lt.u32.totalorder %s2779_s23, %s3822_s1 }
  0xb8   : > { %p2782_p0 = pnand %p2780_p12, %p3884_p2 }
  0xba   : > { %p2783_p7 = pneg %p2782_p0 }
  0xbc   : > { %p2788_p5 = pnand %p2786_p13, %p2783_p7 }
  0xbe   : > { %2791 = shalt.err (!%p2788_p5)
}
  0xbf   : > { %s2792_s16 = scalar_lea.vmem %s343_s3, 128  ;;  %p2800_p8 = scmp.lt.s32.totalorder %s343_s3, %s343_s3 }
  0xc0   : > { %p2793_p11 = scmp.ne.s32.totalorder %s343_s3, %s2792_s16  ;;  %p2801_p1 = scmp.lt.s32.totalorder %s2792_s16, %s2792_s16 }
  0xc2   : > { %p2795_p10 = pnand %p2793_p11, %p3884_p2  ;;  %p2802_p4 = por %p2801_p1, %p2800_p8 }
  0xc4   : > { %p2796_p3 = pneg %p2795_p10 }
  0xc6   : > { %p2803_p6 = pnand %p2802_p4, %p2796_p3 }
  0xc8   : > { %2806 = shalt.err (!%p2803_p6)
}
  0xc9   : > { %p3885_p12 = scmp.ne.s32.totalorder %s3875_s12, 0  ;;  %s481_s4 = scalar_lea.vmem [#allocation16], %s3182_s14 }
  0xca   : > { %s488_s27 = sshll.u32 %s481_s4, 4  ;;  %s3012_s22 = smov [#allocation8]   ;;  %s3378_s27 = int_to_ptr.vmem [resolvable:$true] %s488_s27 }
  0xcb   : > { %2435 = dma.hbm_to_vmem [thread:$0]  (!%p3885_p12), %s3822_s1, 128, %s343_s3, [#allocation7], %s3857_s18, %s3857_s18, %s3006_s19  }
  0xcc   : > { %s3380_s30 = sshll.u32 %s3012_s22, 4  ;;  %s2807_s23 = scalar_lea.hbm %s3354_s21, 256  ;;  %s356_s30 = int_to_ptr.vmem [resolvable:$true] %s3380_s30 }
  0xcd   : > { %p2808_p6 = scmp.ne.s32.totalorder %s3354_s21, %s2807_s23  ;;  %s2812_s15 = scalar_lea.hbm %s3830_s9, 512 }
  0xce   : > { %p2813_p13 = scmp.lt.u32.totalorder %s3354_s21, %s3830_s9  ;;  %p2814_p5 = scmp.lt.u32.totalorder %s2812_s15, %s2807_s23 }
  0xcf   : > { %p2810_p0 = pnand %p2808_p6, %p3208_p9  ;;  %p2816_p10 = scmp.lt.u32.totalorder %s2807_s23, %s3354_s21 }
  0xd0   : > { %p2815_p11 = por %p2814_p5, %p2813_p13 }
  0xd1   : > { %p2811_p7 = pneg %p2810_p0 }
  0xd2   : > { %p2817_p3 = por %p2816_p10, %p2815_p11 }
  0xd4   : > { %p2818_p8 = pnand %p2817_p3, %p2811_p7 }
  0xd6   : > { %2821 = shalt.err (!%p2818_p8)
}
  0xd7   : > { %s2822_s14 = scalar_lea.vmem %s3378_s27, 256  ;;  %s3013_s3 = smov [#allocation16]  }
  0xd8   : > { %p2823_p1 = scmp.ne.s32.totalorder %s3378_s27, %s2822_s14  ;;  %s2827_s25 = sshll.u32 %s3013_s3, 4  ;;  %s2828_s25 = int_to_ptr.vmem [resolvable:$false] %s2827_s25 }
  0xd9   : > { %s2829_s10 = scalar_lea.vmem %s2828_s25, 512  ;;  %p2830_p0 = scmp.lt.s32.totalorder %s3378_s27, %s2828_s25 }
  0xda   : > { %p2825_p4 = pnand %p2823_p1, %p3208_p9  ;;  %p2831_p12 = scmp.lt.s32.totalorder %s2829_s10, %s2822_s14 }
  0xdc   : > { %p2826_p6 = pneg %p2825_p4  ;;  %p2832_p13 = por %p2831_p12, %p2830_p0 }
  0xde   : > { %p2833_p5 = pnand %p2832_p13, %p2826_p6 }
  0xe0   : > { %2836 = shalt.err (!%p2833_p5)
}
  0xe1   : > { %p3886_p7 = scmp.ne.s32.totalorder %s3876_s13, 0  ;;  %s2837_s23 = scalar_lea.hbm %s3823_s2, 512 }
  0xe2   : > { %p2838_p12 = scmp.ne.s32.totalorder %s3823_s2, %s2837_s23  ;;  %p2844_p3 = scmp.lt.u32.totalorder %s2837_s23, %s3823_s2 }
  0xe3   : > { %2460 = dma.hbm_to_vmem [thread:$0]  (!%p3886_p7), %s3354_s21, 256, %s3378_s27, %s3202_s0, %s3857_s18, %s3857_s18, %s3006_s19  }
  0xe4   : > { %p2840_p11 = pnand %p2838_p12, %p3884_p2 }
  0xe6   : > { %p2841_p10 = pneg %p2840_p11 }
  0xe8   : > { %p2846_p8 = pnand %p2844_p3, %p2841_p10 }
  0xea   : > { %2849 = shalt.err (!%p2846_p8)
}
  0xeb   : > { %s2850_s16 = scalar_lea.vmem %s356_s30, 512  ;;  %p2858_p0 = scmp.lt.s32.totalorder %s356_s30, %s356_s30 }
  0xec   : > { %p2851_p1 = scmp.ne.s32.totalorder %s356_s30, %s2850_s16  ;;  %p2859_p13 = scmp.lt.s32.totalorder %s2850_s16, %s2850_s16 }
  0xee   : > { %p2853_p4 = pnand %p2851_p1, %p3884_p2  ;;  %p2860_p5 = por %p2859_p13, %p2858_p0 }
  0xf0   : > { %p2854_p6 = pneg %p2853_p4 }
  0xf2   : > { %p2861_p7 = pnand %p2860_p5, %p2854_p6 }
  0xf4   : > { %2864 = shalt.err (!%p2861_p7)
}
  0xf5   : > { %p3887_p12 = scmp.ne.s32.totalorder %s3875_s12, 0  ;;  %s3888_s21 = smov 8  }
  0xf6   : > { %s3889_s27 = smov 128   ;;  %s3014_s25 = smov [#allocation9]  }
  0xf7   : > { %2438 = dma.hbm_to_vmem [thread:$0]  (!%p3887_p12), %s3823_s2, 512, %s356_s30, [#allocation7], %s3889_s27, %s3889_s27, %s3888_s21  }
  0xf8   : > { %s369_s10 = sshll.u32 %s3014_s25, 4  ;;  %s2150_s4 = sshll.u32 %s3179_s29, 6  ;;  %s370_s10 = int_to_ptr.vmem [resolvable:$true] %s369_s10 }
  0xf9   : > { %s3890_s17 = sld [smem:[#allocation32_spill]] }
  0xff   : > { %s3891_s28 = smov %s3890_s17  ;;  %s2865_s15 = scalar_lea.hbm %s3890_s17, 16 }
 0x100   : > { %p2866_p7 = scmp.ne.s32.totalorder %s3891_s28, %s2865_s15  ;;  %p2872_p3 = scmp.lt.u32.totalorder %s2865_s15, %s3891_s28 }
 0x102   : > { %p2868_p11 = pnand %p2866_p7, %p3884_p2 }
 0x104   : > { %p2869_p10 = pneg %p2868_p11 }
 0x106   : > { %p2874_p8 = pnand %p2872_p3, %p2869_p10 }
 0x108   : > { %2877 = shalt.err (!%p2874_p8)
}
 0x109   : > { %s2878_s30 = scalar_lea.vmem %s370_s10, 16  ;;  %s2885_s29 = scalar_lea.vmem %s370_s10, 32 }
 0x10a   : > { %p2879_p1 = scmp.ne.s32.totalorder %s370_s10, %s2878_s30  ;;  %p2886_p0 = scmp.lt.s32.totalorder %s370_s10, %s370_s10 }
 0x10b   : > { %p2887_p13 = scmp.lt.s32.totalorder %s2885_s29, %s2878_s30 }
 0x10c   : > { %p2881_p4 = pnand %p2879_p1, %p3884_p2 }
 0x10d   : > { %p2888_p5 = por %p2887_p13, %p2886_p0 }
 0x10e   : > { %p2882_p6 = pneg %p2881_p4 }
 0x110   : > { %p2889_p9 = pnand %p2888_p5, %p2882_p6 }
 0x112   : > { %2892 = shalt.err (!%p2889_p9)
}
 0x113   : > { %2441 = dma.hbm_to_vmem [thread:$0]  (!%p3887_p12), %s3891_s28, 16, %s370_s10, [#allocation10]  }
 0x114   : > { %s2220_s18 = sshll.u32 %s2999_s20, 10  ;;  %s502_s3 = scalar_lea.vmem [#allocation17], %s2150_s4 }
 0x115   : > { %s509_s25 = sshll.u32 %s502_s3, 4  ;;  %s3892_s23 = sld [smem:[#allocation34_spill]]  ;;  %s3454_s25 = int_to_ptr.vmem [resolvable:$true] %s509_s25 }
 0x116   : > { %p3893_p2 = scmp.ne.s32.totalorder %s3881_s11, 0 }
 0x11b   : > { %s3452_s17 = scalar_lea.hbm %s3892_s23, %s2220_s18  ;;  %s2898_s4 = scalar_lea.hbm %s3892_s23, 2048 }
 0x11c   : > { %s2893_s12 = scalar_lea.hbm %s3452_s17, 1024  ;;  %p2899_p12 = scmp.lt.u32.totalorder %s3452_s17, %s3892_s23 }
 0x11d   : > { %p2894_p9 = scmp.ne.s32.totalorder %s3452_s17, %s2893_s12  ;;  %p2900_p10 = scmp.lt.u32.totalorder %s2898_s4, %s2893_s12 }
 0x11e   : > { %p2902_p8 = scmp.lt.u32.totalorder %s2893_s12, %s3452_s17 }
 0x11f   : > { %p2896_p7 = pnand %p2894_p9, %p3893_p2  ;;  %p2901_p3 = por %p2900_p10, %p2899_p12 }
 0x121   : > { %p2897_p11 = pneg %p2896_p7  ;;  %p2903_p1 = por %p2902_p8, %p2901_p3 }
 0x123   : > { %p2904_p4 = pnand %p2903_p1, %p2897_p11 }
 0x125   : > { %2907 = shalt.err (!%p2904_p4)
}
 0x126   : > { %s2908_s16 = scalar_lea.vmem %s3454_s25, 1024  ;;  %s3015_s14 = smov [#allocation17]  }
 0x127   : > { %p2909_p6 = scmp.ne.s32.totalorder %s3454_s25, %s2908_s16  ;;  %s2913_s30 = sshll.u32 %s3015_s14, 4  ;;  %s2914_s30 = int_to_ptr.vmem [resolvable:$false] %s2913_s30 }
 0x128   : > { %s2915_s29 = scalar_lea.vmem %s2914_s30, 2048  ;;  %p2916_p5 = scmp.lt.s32.totalorder %s3454_s25, %s2914_s30 }
 0x129   : > { %p2911_p0 = pnand %p2909_p6, %p3893_p2  ;;  %p2917_p9 = scmp.lt.s32.totalorder %s2915_s29, %s2908_s16 }
 0x12b   : > { %p2912_p13 = pneg %p2911_p0  ;;  %p2918_p7 = por %p2917_p9, %p2916_p5 }
 0x12d   : > { %p2919_p12 = pnand %p2918_p7, %p2912_p13 }
 0x12f   : > { %2922 = shalt.err (!%p2919_p12)
}
 0x130   : > { %p3894_p11 = scmp.ne.s32.totalorder %s3876_s13, 0  ;;  %s3895_s21 = smov 64  }
 0x131   : > { %s3896_s11 = sld [smem:[#allocation30_spill]] }
 0x132   : > { %2463 = dma.hbm_to_vmem [thread:$0]  (!%p3894_p11), %s3452_s17, 1024, %s3454_s25, %s3202_s0, %s3895_s21, %s3895_s21, %s3006_s19  }
 0x137   : > { %p3897_p2 = scmp.ne.s32.totalorder %s3896_s11, 0 }
 0x138   : > { %s3898_s27 = sld [smem:[#allocation26_spill]] (!%p3897_p2) }
 0x139   : > { %521 = sbr.rel (%p3897_p2) target bundleno = 2326 (0x916), region = 64 }
 0x13e   : > { %p3899_p10 = scmp.eq.s32.totalorder (!%p3897_p2), %s3898_s27, 0 }
 0x140   : > { %2966 = dma.done.wait (%p3899_p10), [#allocation4], 256   ;;  %p3900_p3 = pmov %p3899_p10 }
 0x142   : > { %2968 = vsyncadd (%p3900_p3), [#allocation4], 4294967040  ;;  %p3901_p8 = pmov %p3900_p3 }
 0x143   : > { %p3902_p1 = pmov %p3900_p3 }
 0x144   : > { %2970 = dma.done.wait (%p3901_p8), [#allocation7], 640  }
 0x145   : > { %2972 = vsyncadd (%p3902_p1), [#allocation7], 4294966656  ;;  %p3903_p4 = pmov %p3902_p1 }
 0x146   : > { %p3904_p6 = pmov %p3902_p1 }
 0x147   : > { %2974 = dma.done.wait (%p3903_p4), [#allocation10], 16  }
 0x148   : > { %2976 = vsyncadd (%p3904_p6), [#allocation10], 4294967280  ;;  %s3905_s0 = sld [smem:[#allocation24_spill]]  ;;  %s3906_s13 = sld [smem:[#allocation29_spill]] }
 0x149   : > { %s539_s19 = sand.u32 1, %s3898_s27  }
 0x14a   : > { %s540_s25 = scalar_lea.sflag [#allocation4], %s539_s19 }
 0x14e   : > { %s3497_s18 = sand.u32 1, %s3905_s0   ;;  %p3907_p0 = scmp.ne.s32.totalorder %s3906_s13, 0 }
 0x14f   : > { %s3500_s3 = sshll.u32 %s3497_s18, 4 }
 0x150   : > { %s543_s24 = scalar_lea.vmem [#allocation11], %s3500_s3 }
 0x151   : > { %2978 = dma.done.wait (%p3907_p0), %s540_s25, 2080  }
 0x152   : > { %2980 = vsyncadd (%p3907_p0), %s540_s25, 4294965216  ;;  %s2162_s22 = sshll.u32 %s3497_s18, 6  ;;  %s552_s17 = scalar_lea.vmem [#allocation12], %s3500_s3 }
 0x153   : > { %s561_s12 = scalar_lea.vmem [#allocation13], %s3500_s3  ;;  %s569_s10 = scalar_lea.vmem [#allocation14], %s3497_s18 }
 0x154   : > { %s577_s20 = scalar_lea.vmem [#allocation15], %s3497_s18  ;;  %s586_s4 = scalar_lea.vmem [#allocation16], %s3500_s3 }
 0x155   : > { %s3513_s15 = scalar_lea.vmem [#allocation17], %s2162_s22  ;;  %p3908_p13 = scmp.ne.s32.totalorder %s3898_s27, 0 }
 0x156   : > { %v662_v0 = vld [vmem:[#allocation3] sm:$0xff] (!%p3908_p13)  ;;  %vm664_vm0 = vcmask (!%p3908_p13), 261120   ;;  %v663_v1 = vld [vmem:[#allocation3 + $0x8] sm:$0xff] (!%p3908_p13) }
 0x157   : > { %661 = sbr.rel (%p3908_p13) target bundleno = 350 (0x15e), region = 112  ;;  %665 = vst.msk [vmem:[#allocation2] sm:$0xff] (!%p3908_p13), %vm664_vm0, %v662_v0  ;;  %666 = vst.msk [vmem:[#allocation2 + $0x8] sm:$0xff] (!%p3908_p13), %vm664_vm0, %v663_v1 }
 0x15e PF: > { %v2524_v2 = vld [vmem:[%s543_s24] sm:$0xff]   ;;  %v3016_v3 = vmov 0.0   ;;  %v2525_v4 = vld [vmem:[%s543_s24 + $0x8] sm:$0xff]   ;;  %vm3017_vm1 = vmmov 0   ;;  %v3018_v7 = vmov 0   ;;  %vm692_vm2 = vcmask 261120  }
 0x15f   : > { %2271 = vmatprep.subr.bf16.mxu0 %v3016_v3  ;;  %2275 = vmatprep.mubr.msk.bf16.mxu0 %vm3017_vm1, %v3016_v3  ;;  %v3520_v5 = vld [vmem:[#allocation2] sm:$0xff]  ;;  %v3522_v6 = vld [vmem:[#allocation2 + $0x8] sm:$0xff]  ;;  %v843_v9 = vld [vmem:[#allocation8 + $0x10] sm:$0xff]  ;;  %s3019_s26 = smov 96   ;;  %vm1084_vm7 = vcmask 1043456   ;;  %vm990_vm8 = vcmask 64512  }
 0x160   : > { %2272 = vmatpush3.bf16.msra.mxu0 %v2524_v2  ;;  %2523 = vset.pattern.permute.xlu1 %v3018_v7  ;;  %v669_v8 = vpack.c.bf16 %v3522_v6, %v3520_v5  ;;  %v2526_v10 = vld [vmem:[%s552_s17] sm:$0xff]   ;;  %v2527_v14 = vld [vmem:[%s552_s17 + $0x8] sm:$0xff]   ;;  %s3909_s16 = sld [smem:[#allocation26_spill]] }
 0x161   : > { %2273 = vmatprep.subr.bf16.mxu0 %v3016_v3  ;;  %2522 = vset.pattern.permute.xlu0 %v3018_v7  ;;  %v841_v11 = vld [vmem:[#allocation8] sm:$0xff]  ;;  %v844_v12 = vld [vmem:[#allocation8 + $0x18] sm:$0xff]  ;;  %v842_v13 = vld [vmem:[#allocation8 + $0x8] sm:$0xff] }
 0x162   : > { %853 = vperm.xlu1 %2523, %v843_v9   ;;  %847 = vperm.xlu0 %2522, %v841_v11   ;;  %v2528_v15 = vld [vmem:[#allocation6] sm:$0xff]   ;;  %v2172_v17 = vld [vmem:[#allocation9] ss:$0 sm:$0xff] }
 0x164   : > { %2274 = vmatpush3.bf16.msra.mxu0 %v2525_v4 }
 0x165   : > { %2279 = vmatprep.subr.bf16.mxu0 %v3016_v3 }
 0x166   : > { %856 = vperm.xlu1 %2523, %v844_v12   ;;  %850 = vperm.xlu0 %2522, %v842_v13   ;;  %p2209_p5 = scmp.ne.s32.totalorder %s3909_s16, 1 }
 0x167   : > { %2276 = vmatmul.mubr.msk.bf16.vlgmr.msra.gmra.mrb[0].mxu0 %vm692_vm2, %v669_v8  ;;  %vm1915_vm11 = vcmask (!%p2209_p5), 257024  }
 0x168   : > { %2280 = vmatpush3.bf16.msra.mxu0 %v2526_v10  ;;  %2283 = vmatprep.mubr.msk.bf16.mxu0 %vm3017_vm1, %v3016_v3 }
 0x169   : > { %2281 = vmatprep.subr.bf16.mxu0 %v3016_v3 }
 0x16c   : > { %2282 = vmatpush3.bf16.msra.mxu0 %v2527_v14 }
 0x16d   : > { %2287 = vmatprep.subr.bf16.mxu0 %v3016_v3 }
 0x16f   : > { %2284 = vmatmul.mubr.msk.bf16.vlgmr.msra.gmra.mrb[4].mxu0 %vm692_vm2, %v2528_v15 }
 0x170   : > { %2288 = vmatpush3.bf16.msra.mxu0 %v2526_v10  ;;  %2291 = vmatprep.mubr.msk.bf16.mxu0 %vm3017_vm1, %v3016_v3 }
 0x171   : > { %2289 = vmatprep.subr.bf16.mxu0 %v3016_v3 }
 0x174   : > { %2290 = vmatpush3.bf16.msra.mxu0 %v2527_v14 }
 0x177   : > { %2292 = vmatmul.mubr.msk.bf16.vlgmr.msra.gmra.mrb[8].mxu0 %vm692_vm2, %v669_v8 }
 0x1e1   : > { %v848_v16 = vpop.permute.xlu0 %847  ;;  %v854_v21 = vpop.permute.xlu1 %853 }
 0x1e2   : > { %vm862_vm3 = vcmp.eq.s32.totalorder %v848_v16, %v2172_v17  ;;  %vm864_vm5 = vcmp.eq.s32.totalorder %v854_v21, %v2172_v17 }
 0x1e3   : > { %v3543_v19 = vsel %vm862_vm3, 1.0, %v3016_v3  ;;  %v3555_v35 = vsel %vm864_vm5, 1.0, %v3016_v3 }
 0x1e5   : > { %v851_v18 = vpop.permute.xlu0 %850  ;;  %v857_v29 = vpop.permute.xlu1 %856 }
 0x1e6   : > { %vm863_vm4 = vcmp.eq.s32.totalorder %v851_v18, %v2172_v17  ;;  %vm865_vm6 = vcmp.eq.s32.totalorder %v857_v29, %v2172_v17 }
 0x1e7   : > { %v3546_v20 = vsel %vm863_vm4, 1.0, %v3016_v3  ;;  %v3558_v36 = vsel %vm865_vm6, 1.0, %v3016_v3 }
 0x23a   : > { %v730_v22 = vpop.f32.mrb[0].mxu0 }
 0x23b   : > { %v2277_v23 = vpop.f32.mrb[1].mxu0  ;;  %v874_v24 = vmul.f32 %v3543_v19, %v730_v22  ;;  %v875_v25 = vmul.f32 %v3546_v20, %v730_v22  ;;  %v876_v38 = vmul.f32 %v3555_v35, %v730_v22  ;;  %v877_v39 = vmul.f32 %v3558_v36, %v730_v22 }
 0x23c   : > { %v733_v26 = vpop.f32.mrb[2].mxu0 }
 0x23d   : > { %v2278_v27 = vpop.f32.mrb[3].mxu0  ;;  %v878_v28 = vpack.c.bf16 %v875_v25, %v874_v24  ;;  %v879_v45 = vpack.c.bf16 %v877_v39, %v876_v38  ;;  %v1213_v48 = vmul.f32 %v3543_v19, %v733_v26  ;;  %v1214_v49 = vmul.f32 %v3546_v20, %v733_v26 }
 0x23e   : > { %v1215_v53 = vmul.f32 %v3555_v35, %v733_v26  ;;  %v1216_v54 = vmul.f32 %v3558_v36, %v733_v26 }
 0x23f   : > { %2297 = vmatprep.mubr.msk.bf16.mxu1 %vm692_vm2, %v878_v28  ;;  %2303 = vmatprep.mubr.msk.bf16.mxu0 %vm692_vm2, %v878_v28  ;;  %v1217_v50 = vpack.c.bf16 %v1214_v49, %v1213_v48 }
 0x240   : > { %v1218_v55 = vpack.c.bf16 %v1216_v54, %v1215_v53 }
 0x242   : > { %v791_v30 = vpop.f32.mrb[4].mxu0 }
 0x243   : > { %v2285_v31 = vpop.f32.mrb[5].mxu0 }
 0x244   : > { %v794_v32 = vpop.f32.mrb[6].mxu0 }
 0x245   : > { %v3552_v33 = vpack.c.bf16 %v794_v32, %v791_v30  ;;  %v2286_v34 = vpop.f32.mrb[7].mxu0 }
 0x247   : > { %2387 = vmatprep.subr.msk.bf16.mxu1 %vm692_vm2, %v3552_v33  ;;  %v887_v37 = vsel %vm692_vm2, %v3552_v33, 0  ;;  %v3571_v47 = vrot.slane %v3552_v33, 4 }
 0x248   : > { %2296 = vmatpush3.bf16.xpose.msra.mxu1 %v887_v37 }
 0x249   : > { %v1227_v51 = vsel %vm692_vm2, %v3571_v47, 0 }
 0x24a   : > { %v832_v40 = vpop.f32.mrb[8].mxu0 }
 0x24b   : > { %v2293_v41 = vpop.f32.mrb[9].mxu0 }
 0x24c   : > { %v835_v42 = vpop.f32.mrb[10].mxu0 }
 0x24d   : > { %v840_v43 = vpack.c.bf16 %v835_v42, %v832_v40  ;;  %v2294_v44 = vpop.f32.mrb[11].mxu0 }
 0x24f   : > { %2298 = vmatmul.mubr.msk.bf16.vlgmr.msra.gmra.mrb[0].mxu1 %vm692_vm2, %v879_v45  ;;  %1076 = vrot.lane.b32.xlu1 %v840_v43, %s3019_s26  ;;  %v939_v46 = vsel %vm692_vm2, %v840_v43, 0  ;;  %v3580_v52 = vrot.slane %v840_v43, 4 }
 0x250   : > { %2388 = vmatprep.subr.msk.bf16.mxu0 %vm692_vm2, %v840_v43 }
 0x251   : > { %2302 = vmatpush3.bf16.xpose.msra.mxu0 %v939_v46  ;;  %v1280_v56 = vsel %vm692_vm2, %v3580_v52, 0 }
 0x252   : > { %2391 = vmatprep.subr.msk.bf16.mxu0 %vm692_vm2, %v3571_v47 }
 0x258   : > { %2304 = vmatmul.mubr.msk.bf16.vlgmr.msra.gmra.mrb[12].mxu0 %vm692_vm2, %v879_v45 }
 0x259   : > { %2320 = vmatpush3.bf16.xpose.msra.mxu0 %v1227_v51  ;;  %2321 = vmatprep.mubr.msk.bf16.mxu0 %vm692_vm2, %v1217_v50 }
 0x25a   : > { %2392 = vmatprep.subr.msk.bf16.mxu0 %vm692_vm2, %v3580_v52 }
 0x260   : > { %2322 = vmatmul.mubr.msk.bf16.vlgmr.msra.gmra.mrb[16].mxu0 %vm692_vm2, %v1218_v55 }
 0x261   : > { %2326 = vmatpush3.bf16.xpose.msra.mxu0 %v1280_v56  ;;  %2327 = vmatprep.mubr.msk.bf16.mxu0 %vm692_vm2, %v1217_v50 }
 0x262   : > { %2343 = vmatprep.subr.bf16.mxu0 %v3016_v3 }
 0x268   : > { %2328 = vmatmul.mubr.msk.bf16.vlgmr.msra.gmra.mrb[20].mxu0 %vm692_vm2, %v1218_v55 }
 0x269   : > { %2347 = vmatprep.mubr.msk.bf16.mxu0 %vm3017_vm1, %v3016_v3 }
 0x2c1   : > { %v1077_v57 = vpop.permute.xlu1 %1076 }
 0x2c2   : > { %v1086_v58 = vsel %vm1084_vm7, %v1077_v57, 0  ;;  %2389 = vmatprep.subr.msk.bf16.mxu1 %vm1084_vm7, %v1077_v57 }
 0x2c3   : > { %2308 = vmatpush3.bf16.msra.mxu1 %v1086_v58 }
 0x322   : > { %v2299_v59 = vpop.f32.mrb[0].mxu1 }
 0x323   : > { %v3597_v60 = vpop.f32.mrb[1].mxu1  ;;  %v997_v61 = vsel %vm990_vm8, %v2299_v59, -inf }
 0x324   : > { %v3600_v62 = vpop.f32.mrb[2].mxu1  ;;  %998 = vmax.xlane.f32.xlu1 %v997_v61  ;;  %v991_v63 = vsel %vm990_vm8, %v3597_v60, -inf }
 0x325   : > { %992 = vmax.xlane.f32.xlu0 %v991_v63  ;;  %v3604_v0 = vpop.f32.mrb[3].mxu1  ;;  %v1000_v2 = vsel %vm990_vm8, %v3600_v62, -inf }
 0x326   : > { %v994_v1 = vsel %vm990_vm8, %v3604_v0, -inf }
 0x328   : > { %995 = vmax.xlane.f32.xlu1 %v994_v1 }
 0x329   : > { %1001 = vmax.xlane.f32.xlu0 %v1000_v2 }
 0x32b   : > { %v2305_v4 = vpop.f32.mrb[12].mxu0 }
 0x32c   : > { %v975_v7 = vpop.f32.mrb[13].mxu0  ;;  %v1009_v8 = vsel %vm990_vm8, %v2305_v4, -inf }
 0x32d   : > { %1010 = vmax.xlane.f32.xlu1 %v1009_v8  ;;  %v2306_v9 = vpop.f32.mrb[14].mxu0  ;;  %v1003_v10 = vsel %vm990_vm8, %v975_v7, -inf }
 0x32e   : > { %1004 = vmax.xlane.f32.xlu0 %v1003_v10  ;;  %v3612_v11 = vpop.f32.mrb[15].mxu0  ;;  %v1012_v12 = vsel %vm990_vm8, %v2306_v9, -inf }
 0x32f   : > { %v1006_v17 = vsel %vm990_vm8, %v3612_v11, -inf }
 0x332   : > { %1013 = vmax.xlane.f32.xlu0 %v1012_v12 }
 0x333   : > { %v3615_v13 = vpop.f32.mrb[16].mxu0 }
 0x334   : > { %v3617_v14 = vpop.f32.mrb[17].mxu0  ;;  %v1337_v15 = vsel %vm990_vm8, %v3615_v13, -inf }
 0x335   : > { %1338 = vmax.xlane.f32.xlu1 %v1337_v15  ;;  %v3621_v16 = vpop.f32.mrb[18].mxu0  ;;  %v1331_v21 = vsel %vm990_vm8, %v3617_v14, -inf }
 0x336   : > { %v3625_v18 = vpop.f32.mrb[19].mxu0  ;;  %1007 = vmax.xlane.f32.xlu0 %v1006_v17  ;;  %v1340_v22 = vsel %vm990_vm8, %v3621_v16, -inf }
 0x337   : > { %v1334_v27 = vsel %vm990_vm8, %v3625_v18, -inf }
 0x339   : > { %1332 = vmax.xlane.f32.xlu1 %v1331_v21 }
 0x33a   : > { %1341 = vmax.xlane.f32.xlu0 %v1340_v22 }
 0x33b   : > { %v3631_v23 = vpop.f32.mrb[20].mxu0 }
 0x33c   : > { %v3633_v24 = vpop.f32.mrb[21].mxu0  ;;  %v1349_v25 = vsel %vm990_vm8, %v3631_v23, -inf }
 0x33d   : > { %1350 = vmax.xlane.f32.xlu1 %v1349_v25  ;;  %v3637_v26 = vpop.f32.mrb[22].mxu0  ;;  %v1343_v29 = vsel %vm990_vm8, %v3633_v24, -inf }
 0x33e   : > { %v3641_v28 = vpop.f32.mrb[23].mxu0  ;;  %1335 = vmax.xlane.f32.xlu0 %v1334_v27  ;;  %v1352_v30 = vsel %vm990_vm8, %v3637_v26, -inf }
 0x33f   : > { %v1346_v31 = vsel %vm990_vm8, %v3641_v28, -inf }
 0x341   : > { %1344 = vmax.xlane.f32.xlu1 %v1343_v29 }
 0x342   : > { %1353 = vmax.xlane.f32.xlu0 %v1352_v30 }
 0x346   : > { %1347 = vmax.xlane.f32.xlu0 %v1346_v31 }
 0x352   : > { %1415 = vrot.lane.b32.xlu1 %v3580_v52, %s3019_s26 }
 0x356   : > { %1475 = vrot.lane.b32.xlu1 %v3571_v47, %s3019_s26 }
 0x35c   : > { %1138 = vrot.lane.b32.xlu0 %v3552_v33, %s3019_s26 }
 0x3b1   : > { %v999_v32 = vpop.xlane.xlu1 %998 }
 0x3b2   : > { %v993_v34 = vpop.xlane.xlu0 %992 }
 0x3b5   : > { %v996_v37 = vpop.xlane.xlu1 %995 }
 0x3b6   : > { %v1002_v38 = vpop.xlane.xlu0 %1001 }
 0x3ba   : > { %v1011_v39 = vpop.xlane.xlu1 %1010 }
 0x3bb   : > { %v1017_v40 = vmax.f32 %v999_v32, %v1011_v39  ;;  %v1005_v41 = vpop.xlane.xlu0 %1004 }
 0x3bc   : > { %v1015_v42 = vmax.f32 %v993_v34, %v1005_v41 }
 0x3bd   : > { %v1021_v43 = vsub.f32 %v2299_v59, %v1017_v40  ;;  %v1033_v44 = vsub.f32 %v2305_v4, %v1017_v40 }
 0x3be   : > { %v1019_v45 = vsub.f32 %v3597_v60, %v1015_v42  ;;  %v1031_v47 = vsub.f32 %v975_v7, %v1015_v42 }
 0x3bf   : > { %v1027_v46 = vmul.f32 1.442695, %v1021_v43  ;;  %v1039_v48 = vmul.f32 1.442695, %v1033_v44  ;;  %v1014_v49 = vpop.xlane.xlu0 %1013 }
 0x3c0   : > { %v1023_v50 = vmul.f32 1.442695, %v1019_v45  ;;  %v1018_v51 = vmax.f32 %v1002_v38, %v1014_v49  ;;  %v1035_v55 = vmul.f32 1.442695, %v1031_v47 }
 0x3c1   : > { %2541 = vpow2.f32 %v1027_v46 }
 0x3c2   : > { %2543 = vpow2.f32 %v1039_v48  ;;  %v1022_v33 = vsub.f32 %v3600_v62, %v1018_v51  ;;  %v1034_v52 = vsub.f32 %v2306_v9, %v1018_v51  ;;  %v1339_v53 = vpop.xlane.xlu1 %1338 }
 0x3c3   : > { %2545 = vpow2.f32 %v1023_v50  ;;  %v1008_v54 = vpop.xlane.xlu0 %1007 }
 0x3c4   : > { %v1029_v56 = vmul.f32 1.442695, %v1022_v33  ;;  %v1041_v57 = vmul.f32 1.442695, %v1034_v52  ;;  %v1016_v58 = vmax.f32 %v996_v37, %v1008_v54 }
 0x3c6   : > { %2547 = vpow2.f32 %v1029_v56  ;;  %v1020_v59 = vsub.f32 %v3604_v0, %v1016_v58  ;;  %v1032_v60 = vsub.f32 %v3612_v11, %v1016_v58  ;;  %v1333_v61 = vpop.xlane.xlu1 %1332 }
 0x3c7   : > { %2549 = vpow2.f32 %v1041_v57  ;;  %v1342_v63 = vpop.xlane.xlu0 %1341 }
 0x3c8   : > { %2551 = vpow2.f32 %v1035_v55  ;;  %v1025_v1 = vmul.f32 1.442695, %v1020_v59  ;;  %v1037_v2 = vmul.f32 1.442695, %v1032_v60 }
 0x3ca   : > { %2553 = vpow2.f32 %v1025_v1  ;;  %v1351_v62 = vpop.xlane.xlu1 %1350 }
 0x3cb   : > { %v3659_v4 = vpop.eup %2541  ;;  %2555 = vpow2.f32 %v1037_v2  ;;  %v1357_v7 = vmax.f32 %v1339_v53, %v1351_v62  ;;  %v1336_v8 = vpop.xlane.xlu0 %1335 }
 0x3cc   : > { %v2544_v9 = vpop.eup %2543  ;;  %v1049_v10 = vsel %vm990_vm8, %v3659_v4, 0.0 }
 0x3cd   : > { %v2546_v0 = vpop.eup %2545  ;;  %v1361_v11 = vsub.f32 %v3615_v13, %v1357_v7  ;;  %v1373_v12 = vsub.f32 %v3631_v23, %v1357_v7  ;;  %1050 = vadd.xlane.f32.xlu1 %v1049_v10  ;;  %v1061_v15 = vsel %vm990_vm8, %v2544_v9, 0.0 }
 0x3ce   : > { %1062 = vadd.xlane.f32.xlu0 %v1061_v15  ;;  %v1345_v17 = vpop.xlane.xlu1 %1344  ;;  %v1043_v31 = vsel %vm990_vm8, %v2546_v0, 0.0 }
 0x3cf   : > { %v1367_v21 = vmul.f32 1.442695, %v1361_v11  ;;  %v1379_v22 = vmul.f32 1.442695, %v1373_v12  ;;  %v1355_v25 = vmax.f32 %v1333_v61, %v1345_v17  ;;  %v1354_v27 = vpop.xlane.xlu0 %1353 }
 0x3d0   : > { %v3666_v29 = vpop.eup %2547  ;;  %v1358_v30 = vmax.f32 %v1342_v63, %v1354_v27  ;;  %v2529_v27 = vld [vmem:[%s561_s12] sm:$0xff]  }
 0x3d1   : > { %v2550_v32 = vpop.eup %2549  ;;  %2557 = vpow2.f32 %v1367_v21  ;;  %v1359_v13 = vsub.f32 %v3617_v14, %v1355_v25  ;;  %v1371_v23 = vsub.f32 %v3633_v24, %v1355_v25  ;;  %v1052_v34 = vsel %vm990_vm8, %v3666_v29, 0.0  ;;  %2344 = vmatpush3.bf16.msra.mxu0 %v2529_v27 }
 0x3d2   : > { %v2552_v37 = vpop.eup %2551  ;;  %v1362_v38 = vsub.f32 %v3621_v16, %v1358_v30  ;;  %v1374_v39 = vsub.f32 %v3637_v26, %v1358_v30  ;;  %1044 = vadd.xlane.f32.xlu0 %v1043_v31  ;;  %1053 = vadd.xlane.f32.xlu1 %v1052_v34  ;;  %v1074_v40 = vpack.c.bf16 %v2550_v32, %v2544_v9  ;;  %2559 = vpow2.f32 %v1379_v22  ;;  %v1416_v55 = vpop.permute.xlu1 %1415 }
 0x3d3   : > { %v1363_v41 = vmul.f32 1.442695, %v1359_v13  ;;  %v1375_v42 = vmul.f32 1.442695, %v1371_v23  ;;  %v1348_v43 = vpop.xlane.xlu0 %1347  ;;  %v1072_v24 = vpack.c.bf16 %v3666_v29, %v3659_v4  ;;  %v1055_v16 = vsel %vm990_vm8, %v2552_v37, 0.0  ;;  %2345 = vmatprep.subr.bf16.mxu0 %v3016_v3  ;;  %v2530_v29 = vld [vmem:[%s561_s12 + $0x8] sm:$0xff]  }
 0x3d4   : > { %v2554_v44 = vpop.eup %2553  ;;  %v1369_v45 = vmul.f32 1.442695, %v1362_v38  ;;  %v1381_v14 = vmul.f32 1.442695, %v1374_v39  ;;  %v1356_v46 = vmax.f32 %v1336_v8, %v1348_v43  ;;  %v1424_v10 = vsel %vm1084_vm7, %v1416_v55, 0 }
 0x3d5   : > { %v2556_v48 = vpop.eup %2555  ;;  %2561 = vpow2.f32 %v1363_v41  ;;  %v1046_v26 = vsel %vm990_vm8, %v2554_v44, 0.0  ;;  %v1071_v49 = vpack.c.bf16 %v2554_v44, %v2546_v0  ;;  %2346 = vmatpush3.bf16.msra.mxu0 %v2530_v29 }
 0x3d6   : > { %2563 = vpow2.f32 %v1375_v42  ;;  %v1360_v50 = vsub.f32 %v3625_v18, %v1356_v46  ;;  %v1372_v47 = vsub.f32 %v3641_v28, %v1356_v46  ;;  %1056 = vadd.xlane.f32.xlu0 %v1055_v16  ;;  %1047 = vadd.xlane.f32.xlu1 %v1046_v26  ;;  %v1073_v51 = vpack.c.bf16 %v2556_v48, %v2552_v37  ;;  %v1476_v12 = vpop.permute.xlu1 %1475 }
 0x3d7   : > { %2565 = vpow2.f32 %v1369_v45  ;;  %v1139_v33 = vpop.permute.xlu0 %1138  ;;  %v1064_v18 = vsel %vm990_vm8, %v2550_v32, 0.0  ;;  %v1058_v58 = vsel %vm990_vm8, %v2556_v48, 0.0  ;;  %v1484_v22 = vsel %vm1084_vm7, %v1476_v12, 0  ;;  %2351 = vmatprep.subr.bf16.mxu0 %v3016_v3 }
 0x3d8   : > { %2567 = vpow2.f32 %v1381_v14  ;;  %v1365_v52 = vmul.f32 1.442695, %v1360_v50  ;;  %v1377_v53 = vmul.f32 1.442695, %v1372_v47  ;;  %2309 = vmatprep.mubr.msk.bf16.mxu1 %vm990_vm8, %v1073_v51  ;;  %v1147_v54 = vsel %vm1084_vm7, %v1139_v33, 0  ;;  %2390 = vmatprep.subr.msk.bf16.mxu1 %vm1084_vm7, %v1139_v33 }
 0x3d9   : > { %2310 = vmatmul.mubr.msk.bf16.vlgmr.msra.gmra.mrb[4].mxu1 %vm990_vm8, %v1074_v40 }
 0x3da   : > { %2569 = vpow2.f32 %v1365_v52  ;;  %1065 = vadd.xlane.f32.xlu0 %v1064_v18  ;;  %2314 = vmatpush3.bf16.msra.mxu1 %v1147_v54 }
 0x3db   : > { %v2558_v28 = vpop.eup %2557  ;;  %2571 = vpow2.f32 %v1377_v53  ;;  %2315 = vmatprep.mubr.msk.bf16.mxu1 %vm990_vm8, %v1071_v49  ;;  %2393 = vmatprep.subr.msk.bf16.mxu1 %vm1084_vm7, %v1416_v55 }
 0x3dc   : > { %v1389_v56 = vsel %vm990_vm8, %v2558_v28, 0.0  ;;  %v2560_v57 = vpop.eup %2559 }
 0x3dd   : > { %1390 = vadd.xlane.f32.xlu1 %v1389_v56  ;;  %v1401_v1 = vsel %vm990_vm8, %v2560_v57, 0.0 }
 0x3de   : > { %1059 = vadd.xlane.f32.xlu0 %v1058_v58 }
 0x3df   : > { %v2562_v59 = vpop.eup %2561 }
 0x3e0   : > { %v2564_v60 = vpop.eup %2563  ;;  %v1383_v61 = vsel %vm990_vm8, %v2562_v59, 0.0 }
 0x3e1   : > { %v2566_v63 = vpop.eup %2565  ;;  %1384 = vadd.xlane.f32.xlu1 %v1383_v61  ;;  %v1395_v8 = vsel %vm990_vm8, %v2564_v60, 0.0 }
 0x3e2   : > { %v2568_v2 = vpop.eup %2567  ;;  %1402 = vadd.xlane.f32.xlu0 %v1401_v1  ;;  %v1412_v62 = vpack.c.bf16 %v2566_v63, %v2558_v28  ;;  %v1392_v17 = vsel %vm990_vm8, %v2566_v63, 0.0 }
 0x3e3   : > { %v1414_v4 = vpack.c.bf16 %v2568_v2, %v2560_v57  ;;  %v1404_v25 = vsel %vm990_vm8, %v2568_v2, 0.0 }
 0x3e4   : > { %v2570_v7 = vpop.eup %2569 }
 0x3e5   : > { %v2572_v9 = vpop.eup %2571  ;;  %2316 = vmatmul.mubr.msk.bf16.vlgmr.msra.gmra.mrb[4].mxu1 %vm990_vm8, %v1072_v24  ;;  %1396 = vadd.xlane.f32.xlu1 %v1395_v8  ;;  %v1386_v0 = vsel %vm990_vm8, %v2570_v7, 0.0  ;;  %v1411_v11 = vpack.c.bf16 %v2570_v7, %v2562_v59 }
 0x3e6   : > { %2332 = vmatpush3.bf16.msra.mxu1 %v1424_v10  ;;  %1387 = vadd.xlane.f32.xlu0 %v1386_v0  ;;  %v1413_v15 = vpack.c.bf16 %v2572_v9, %v2564_v60  ;;  %v1398_v21 = vsel %vm990_vm8, %v2572_v9, 0.0 }
 0x3e7   : > { %2394 = vmatprep.subr.msk.bf16.mxu1 %vm1084_vm7, %v1476_v12 }
 0x3e8   : > { %2333 = vmatprep.mubr.msk.bf16.mxu1 %vm990_vm8, %v1413_v15 }
 0x3e9   : > { %1393 = vadd.xlane.f32.xlu1 %v1392_v17 }
 0x3ea   : > { %1399 = vadd.xlane.f32.xlu0 %v1398_v21 }
 0x3ed   : > { %2334 = vmatmul.mubr.msk.bf16.vlgmr.msra.gmra.mrb[8].mxu1 %vm990_vm8, %v1414_v4 }
 0x3ee   : > { %2338 = vmatpush3.bf16.msra.mxu1 %v1484_v22  ;;  %2339 = vmatprep.mubr.msk.bf16.mxu1 %vm990_vm8, %v1411_v11 }
 0x3ef   : > { %1405 = vadd.xlane.f32.xlu0 %v1404_v25  ;;  %2359 = vmatprep.subr.bf16.mxu1 %v3016_v3 }
 0x3f9   : > { %2340 = vmatmul.mubr.msk.bf16.vlgmr.msra.gmra.mrb[8].mxu1 %vm990_vm8, %v1412_v62 }
 0x3fa   : > { %2375 = vmatprep.mubr.msk.bf16.mxu1 %vm3017_vm1, %v3016_v3 }
 0x45a   : > { %v1051_v13 = vpop.xlane.xlu1 %1050 }
 0x45b   : > { %v1063_v30 = vpop.xlane.xlu0 %1062 }
 0x45c   : > { %v1069_v39 = vadd.f32 %v1063_v30, %v1051_v13 }
 0x45f   : > { %v1045_v31 = vpop.xlane.xlu0 %1044  ;;  %v1054_v34 = vpop.xlane.xlu1 %1053 }
 0x463   : > { %v1057_v32 = vpop.xlane.xlu0 %1056  ;;  %v1048_v40 = vpop.xlane.xlu1 %1047 }
 0x464   : > { %v1067_v38 = vadd.f32 %v1057_v32, %v1045_v31 }
 0x466   : > { %2573 = vrcp.f32 %v1067_v38 }
 0x467   : > { %v1066_v23 = vpop.xlane.xlu0 %1065  ;;  %2575 = vrcp.f32 %v1069_v39 }
 0x468   : > { %v1070_v43 = vadd.f32 %v1066_v23, %v1054_v34 }
 0x46a   : > { %v1391_v44 = vpop.xlane.xlu1 %1390 }
 0x46b   : > { %v1060_v37 = vpop.xlane.xlu0 %1059 }
 0x46c   : > { %v1068_v41 = vadd.f32 %v1060_v37, %v1048_v40 }
 0x46e   : > { %2577 = vrcp.f32 %v1068_v41  ;;  %v1385_v14 = vpop.xlane.xlu1 %1384 }
 0x46f   : > { %v1403_v42 = vpop.xlane.xlu0 %1402  ;;  %2579 = vrcp.f32 %v1070_v43 }
 0x470   : > { %v2574_v24 = vpop.eup %2573  ;;  %v1409_v57 = vadd.f32 %v1403_v42, %v1391_v44 }
 0x471   : > { %v2576_v16 = vpop.eup %2575 }
 0x472   : > { %v1397_v33 = vpop.xlane.xlu1 %1396 }
 0x473   : > { %v1388_v45 = vpop.xlane.xlu0 %1387  ;;  %v1407_v56 = vadd.f32 %v1397_v33, %v1385_v14 }
 0x475   : > { %2581 = vrcp.f32 %v1407_v56  ;;  %v2197_v56 = vld [vmem:[%s577_s20] ss:$0 sm:$0xff] }
 0x476   : > { %v1394_v63 = vpop.xlane.xlu1 %1393  ;;  %2583 = vrcp.f32 %v1409_v57 }
 0x477   : > { %v1400_v26 = vpop.xlane.xlu0 %1399 }
 0x478   : > { %v2578_v47 = vpop.eup %2577  ;;  %v1408_v61 = vadd.f32 %v1400_v26, %v1388_v45 }
 0x479   : > { %v2580_v54 = vpop.eup %2579 }
 0x47a   : > { %2585 = vrcp.f32 %v1408_v61  ;;  %v2533_v61 = vld [vmem:[%s3513_s15] sm:$0xff]  }
 0x47b   : > { %2360 = vmatpush3.bf16.msra.mxu1 %v2533_v61 }
 0x47c   : > { %v1406_v58 = vpop.xlane.xlu0 %1405  ;;  %2361 = vmatprep.subr.bf16.mxu1 %v3016_v3 }
 0x47d   : > { %v1410_v62 = vadd.f32 %v1406_v58, %v1394_v63  ;;  %v2534_v63 = vld [vmem:[%s3513_s15 + $0x8] sm:$0xff]  }
 0x47f   : > { %2587 = vrcp.f32 %v1410_v62  ;;  %v2582_v8 = vpop.eup %2581  ;;  %2362 = vmatpush3.bf16.msra.mxu1 %v2534_v63  ;;  %v2537_v62 = vld [vmem:[%s3513_s15 + $0x20] sm:$0xff]  }
 0x480   : > { %v2584_v10 = vpop.eup %2583  ;;  %2363 = vmatprep.subr.bf16.mxu1 %v3016_v3 }
 0x484   : > { %v2586_v12 = vpop.eup %2585 }
 0x489   : > { %v2588_v22 = vpop.eup %2587 }
 0x4b8   : > { %v2317_v46 = vpop.f32.mrb[4].mxu1 }
 0x4b9   : > { %v1183_v48 = vpop.f32.mrb[5].mxu1  ;;  %v1203_v52 = vmul.f32 %v2576_v16, %v2317_v46  ;;  %v2532_v16 = vld [vmem:[%s586_s4 + $0x8] sm:$0xff]  }
 0x4ba   : > { %v1199_v49 = vmul.f32 %v2574_v24, %v1183_v48  ;;  %v2318_v50 = vpop.f32.mrb[6].mxu1  ;;  %v2531_v48 = vld [vmem:[%s586_s4] sm:$0xff]  }
 0x4bb   : > { %v1186_v51 = vpop.f32.mrb[7].mxu1  ;;  %v1205_v55 = vmul.f32 %v2580_v54, %v2318_v50  ;;  %v1208_v59 = vmul.f32 %v3555_v35, %v1203_v52 }
 0x4bc   : > { %v1201_v53 = vmul.f32 %v2578_v47, %v1186_v51  ;;  %v1206_v18 = vmul.f32 %v3543_v19, %v1199_v49 }
 0x4bd   : > { %v1209_v1 = vmul.f32 %v3558_v36, %v1205_v55 }
 0x4be   : > { %v1207_v28 = vmul.f32 %v3546_v20, %v1201_v53  ;;  %v2196_v53 = vld [vmem:[%s569_s10] ss:$0 sm:$0xff] }
 0x4c0   : > { %v1210_v60 = vadd.f32 %v1207_v28, %v1206_v18 }
 0x4c2   : > { %v1211_v2 = vadd.f32 %v1210_v60, %v1208_v59 }
 0x4c4   : > { %v1212_v4 = vadd.f32 %v1211_v2, %v1209_v1  ;;  %v2535_v1 = vld [vmem:[%s3513_s15 + $0x10] sm:$0xff]   ;;  %v2536_v2 = vld [vmem:[%s3513_s15 + $0x18] sm:$0xff]  }
 0x4c5   : > { %2364 = vmatpush3.bf16.msra.mxu1 %v2535_v1 }
 0x4c6   : > { %2365 = vmatprep.subr.bf16.mxu1 %v3016_v3 }
 0x4c9   : > { %2366 = vmatpush3.bf16.msra.mxu1 %v2536_v2 }
 0x4ca   : > { %2367 = vmatprep.subr.bf16.mxu1 %v3016_v3 }
 0x4cc   : > { %v2341_v7 = vpop.f32.mrb[8].mxu1 }
 0x4cd   : > { %v1520_v9 = vpop.f32.mrb[9].mxu1  ;;  %v1540_v17 = vmul.f32 %v2584_v10, %v2341_v7  ;;  %2368 = vmatpush3.bf16.msra.mxu1 %v2537_v62  ;;  %v2539_v7 = vld [vmem:[%s3513_s15 + $0x30] sm:$0xff]  }
 0x4ce   : > { %v1536_v0 = vmul.f32 %v2582_v8, %v1520_v9  ;;  %v2342_v11 = vpop.f32.mrb[10].mxu1  ;;  %2369 = vmatprep.subr.bf16.mxu1 %v3016_v3  ;;  %v2540_v8 = vld [vmem:[%s3513_s15 + $0x38] sm:$0xff]  }
 0x4cf   : > { %v1523_v15 = vpop.f32.mrb[11].mxu1  ;;  %v1542_v27 = vmul.f32 %v2588_v22, %v2342_v11  ;;  %v1545_v30 = vmul.f32 %v3555_v35, %v1540_v17 }
 0x4d0   : > { %v1538_v21 = vmul.f32 %v2586_v12, %v1523_v15  ;;  %v1543_v25 = vmul.f32 %v3543_v19, %v1536_v0 }
 0x4d1   : > { %v1546_v32 = vmul.f32 %v3558_v36, %v1542_v27 }
 0x4d2   : > { %v1544_v29 = vmul.f32 %v3546_v20, %v1538_v21 }
 0x4d4   : > { %v1547_v31 = vadd.f32 %v1544_v29, %v1543_v25 }
 0x4d6   : > { %v1548_v13 = vadd.f32 %v1547_v31, %v1545_v30 }
 0x4d8   : > { %v1549_v23 = vadd.f32 %v1548_v13, %v1546_v32 }
 0x4da   : > { %v1550_v34 = vpack.c.bf16 %v1549_v23, %v1212_v4  ;;  %v2538_v4 = vld [vmem:[%s3513_s15 + $0x28] sm:$0xff]  }
 0x4db   : > { %2370 = vmatpush3.bf16.msra.mxu1 %v2538_v4 }
 0x4dc   : > { %2348 = vmatmul.mubr.msk.bf16.vlgmr.msra.gmra.mrb[24].mxu0 %vm692_vm2, %v1550_v34  ;;  %2371 = vmatprep.subr.bf16.mxu1 %v3016_v3 }
 0x4dd   : > { %2355 = vmatprep.mubr.msk.bf16.mxu0 %vm3017_vm1, %v3016_v3  ;;  %2352 = vmatpush3.bf16.msra.mxu0 %v2531_v48 }
 0x4de   : > { %2353 = vmatprep.subr.bf16.mxu0 %v3016_v3 }
 0x4df   : > { %2372 = vmatpush3.bf16.msra.mxu1 %v2539_v7 }
 0x4e0   : > { %2373 = vmatprep.subr.bf16.mxu1 %v3016_v3 }
 0x4e1   : > { %2354 = vmatpush3.bf16.msra.mxu0 %v2532_v16 }
 0x4e3   : > { %2374 = vmatpush3.bf16.msra.mxu1 %v2540_v8 }
 0x5af   : > { %v1604_v37 = vpop.f32.mrb[24].mxu0 }
 0x5b0   : > { %v3726_v38 = vadd.f32 %v1604_v37, %v3520_v5  ;;  %v2349_v19 = vpop.f32.mrb[25].mxu0 }
 0x5b1   : > { %v1607_v39 = vpop.f32.mrb[26].mxu0 }
 0x5b2   : > { %v3729_v20 = vadd.f32 %v1607_v39, %v3522_v6  ;;  %v2350_v35 = vpop.f32.mrb[27].mxu0  ;;  %v1615_v36 = vsel %vm692_vm2, %v3726_v38, 0.0 }
 0x5b3   : > { %1616 = vadd.xlane.f32.xlu1 %v1615_v36 }
 0x5b4   : > { %v1618_v40 = vsel %vm692_vm2, %v3729_v20, 0.0 }
 0x5b5   : > { %1619 = vadd.xlane.f32.xlu0 %v1618_v40 }
 0x640   : > { %v1617_v41 = vpop.xlane.xlu1 %1616 }
 0x641   : > { %v1622_v42 = vmul.f32 0.03125, %v1617_v41 }
 0x642   : > { %v1620_v5 = vpop.xlane.xlu0 %1619 }
 0x643   : > { %v1624_v43 = vsub.f32 %v3726_v38, %v1622_v42  ;;  %v1623_v44 = vmul.f32 0.03125, %v1620_v5 }
 0x645   : > { %v1625_v6 = vsub.f32 %v3729_v20, %v1623_v44  ;;  %v1626_v45 = vmul.f32 %v1624_v43, %v1624_v43 }
 0x647   : > { %v1628_v14 = vsel %vm692_vm2, %v1626_v45, 0.0  ;;  %v1627_v46 = vmul.f32 %v1625_v6, %v1625_v6 }
 0x648   : > { %1629 = vadd.xlane.f32.xlu1 %v1628_v14 }
 0x649   : > { %v1631_v24 = vsel %vm692_vm2, %v1627_v46, 0.0 }
 0x64a   : > { %1632 = vadd.xlane.f32.xlu0 %v1631_v24 }
 0x6d5   : > { %v1630_v26 = vpop.xlane.xlu1 %1629 }
 0x6d6   : > { %v1634_v49 = vmul.f32 0.03125, %v1630_v26 }
 0x6d7   : > { %v1633_v50 = vpop.xlane.xlu0 %1632 }
 0x6d8   : > { %v1636_v47 = vadd.f32 1e-05, %v1634_v49  ;;  %v1635_v51 = vmul.f32 0.03125, %v1633_v50 }
 0x6da   : > { %2589 = vrsqrt.f32 %v1636_v47  ;;  %v1637_v33 = vadd.f32 1e-05, %v1635_v51 }
 0x6dc   : > { %2591 = vrsqrt.f32 %v1637_v33 }
 0x6e4   : > { %v2590_v52 = vpop.eup %2589 }
 0x6e5   : > { %v1640_v54 = vmul.f32 %v2590_v52, %v1624_v43 }
 0x6e6   : > { %v2592_v18 = vpop.eup %2591 }
 0x6e7   : > { %v1648_v55 = vmul.f32 %v2196_v53, %v1640_v54  ;;  %v1641_v28 = vmul.f32 %v2592_v18, %v1625_v6 }
 0x6e9   : > { %v1649_v57 = vmul.f32 %v2196_v53, %v1641_v28  ;;  %v1656_v58 = vadd.f32 %v2197_v56, %v1648_v55 }
 0x6eb   : > { %v1657_v59 = vadd.f32 %v2197_v56, %v1649_v57 }
 0x6ed   : > { %v1658_v60 = vpack.c.bf16 %v1657_v59, %v1656_v58 }
 0x6ef   : > { %2356 = vmatmul.mubr.msk.bf16.vlgmr.msra.gmra.mrb[28].mxu0 %vm692_vm2, %v1658_v60 }
 0x7c2   : > { %v3764_v9 = vpop.f32.mrb[28].mxu0 }
 0x7c3   : > { %v3767_v10 = vmul.f32 0.70710677, %v3764_v9  ;;  %v2357_v0 = vpop.f32.mrb[29].mxu0 }
 0x7c4   : > { %v3769_v11 = vpop.f32.mrb[30].mxu0 }
 0x7c5   : > { %v1723_v12 = vand.u32 2147483647, %v3767_v10  ;;  %v3773_v15 = vmul.f32 0.70710677, %v3769_v11  ;;  %v2358_v17 = vpop.f32.mrb[31].mxu0  ;;  %vm1781_vm9 = vcmp.ge.f32.partialorder %v3767_v10, 0.0 }
 0x7c7   : > { %v1725_v21 = vmul.f32 0.5, %v1723_v12  ;;  %v1724_v22 = vand.u32 2147483647, %v3773_v15  ;;  %v1769_v53 = vsub.f32 0.0, %v1723_v12  ;;  %vm1782_vm10 = vcmp.ge.f32.partialorder %v3773_v15, 0.0 }
 0x7c9   : > { %v1727_v3 = vadd.f32 1.0, %v1725_v21  ;;  %v1726_v25 = vmul.f32 0.5, %v1724_v22  ;;  %v1770_v28 = vsub.f32 0.0, %v1724_v22  ;;  %v1771_v57 = vmul.f32 %v1769_v53, %v1723_v12 }
 0x7cb   : > { %2593 = vrcp.f32 %v1727_v3  ;;  %v1728_v27 = vadd.f32 1.0, %v1726_v25  ;;  %v1772_v61 = vmul.f32 %v1770_v28, %v1724_v22  ;;  %v1719_v22 = vmul.f32 0.5, %v3764_v9 }
 0x7cd   : > { %2595 = vrcp.f32 %v1728_v27 }
 0x7d5   : > { %v2594_v29 = vpop.eup %2593 }
 0x7d6   : > { %v1733_v30 = vmul.f32 0.17087276, %v2594_v29 }
 0x7d7   : > { %v2596_v31 = vpop.eup %2595 }
 0x7d8   : > { %v1735_v32 = vadd.f32 -0.82215226, %v1733_v30  ;;  %v1734_v13 = vmul.f32 0.17087276, %v2596_v31 }
 0x7da   : > { %v1737_v23 = vmul.f32 %v2594_v29, %v1735_v32  ;;  %v1736_v34 = vadd.f32 -0.82215226, %v1734_v13  ;;  %v1720_v32 = vmul.f32 0.5, %v3769_v11 }
 0x7dc   : > { %v1739_v37 = vadd.f32 1.4885159, %v1737_v23  ;;  %v1738_v19 = vmul.f32 %v2596_v31, %v1736_v34 }
 0x7de   : > { %v1741_v39 = vmul.f32 %v2594_v29, %v1739_v37  ;;  %v1740_v35 = vadd.f32 1.4885159, %v1738_v19 }
 0x7e0   : > { %v1743_v36 = vadd.f32 -1.135204, %v1741_v39  ;;  %v1742_v40 = vmul.f32 %v2596_v31, %v1740_v35 }
 0x7e2   : > { %v1745_v41 = vmul.f32 %v2594_v29, %v1743_v36  ;;  %v1744_v42 = vadd.f32 -1.135204, %v1742_v40 }
 0x7e4   : > { %v1747_v5 = vadd.f32 0.27886808, %v1745_v41  ;;  %v1746_v43 = vmul.f32 %v2596_v31, %v1744_v42 }
 0x7e6   : > { %v1749_v44 = vmul.f32 %v2594_v29, %v1747_v5  ;;  %v1748_v6 = vadd.f32 0.27886808, %v1746_v43 }
 0x7e8   : > { %v1751_v45 = vadd.f32 -0.18628806, %v1749_v44  ;;  %v1750_v14 = vmul.f32 %v2596_v31, %v1748_v6 }
 0x7ea   : > { %v1753_v46 = vmul.f32 %v2594_v29, %v1751_v45  ;;  %v1752_v24 = vadd.f32 -0.18628806, %v1750_v14 }
 0x7ec   : > { %v1755_v48 = vadd.f32 0.09678418, %v1753_v46  ;;  %v1754_v16 = vmul.f32 %v2596_v31, %v1752_v24 }
 0x7ee   : > { %v1757_v26 = vmul.f32 %v2594_v29, %v1755_v48  ;;  %v1756_v49 = vadd.f32 0.09678418, %v1754_v16 }
 0x7f0   : > { %v1759_v50 = vadd.f32 0.37409195, %v1757_v26  ;;  %v1758_v47 = vmul.f32 %v2596_v31, %v1756_v49 }
 0x7f2   : > { %v1761_v51 = vmul.f32 %v2594_v29, %v1759_v50  ;;  %v1760_v33 = vadd.f32 0.37409195, %v1758_v47 }
 0x7f4   : > { %v1763_v52 = vadd.f32 1.0000237, %v1761_v51  ;;  %v1762_v54 = vmul.f32 %v2596_v31, %v1760_v33 }
 0x7f6   : > { %v1765_v18 = vmul.f32 %v2594_v29, %v1763_v52  ;;  %v1764_v55 = vadd.f32 1.0000237, %v1762_v54 }
 0x7f8   : > { %v1767_v56 = vadd.f32 -1.2655122, %v1765_v18  ;;  %v1766_v58 = vmul.f32 %v2596_v31, %v1764_v55 }
 0x7fa   : > { %v1773_v59 = vadd.f32 %v1771_v57, %v1767_v56  ;;  %v1768_v60 = vadd.f32 -1.2655122, %v1766_v58 }
 0x7fc   : > { %v1775_v63 = vmul.f32 1.442695, %v1773_v59  ;;  %v1774_v1 = vadd.f32 %v1772_v61, %v1768_v60 }
 0x7fe   : > { %2597 = vpow2.f32 %v1775_v63  ;;  %v1777_v2 = vmul.f32 1.442695, %v1774_v1 }
 0x800   : > { %2599 = vpow2.f32 %v1777_v2 }
 0x808   : > { %v2598_v62 = vpop.eup %2597 }
 0x809   : > { %v1779_v4 = vmul.f32 %v2598_v62, %v2594_v29 }
 0x80a   : > { %v2600_v7 = vpop.eup %2599 }
 0x80b   : > { %v1783_v8 = vsub.f32 2.0, %v1779_v4  ;;  %v1780_v0 = vmul.f32 %v2600_v7, %v2596_v31 }
 0x80d   : > { %v1785_v17 = vsel %vm1781_vm9, %v1779_v4, %v1783_v8  ;;  %v1784_v21 = vsub.f32 2.0, %v1780_v0 }
 0x80e   : > { %v1787_v3 = vsub.f32 1.0, %v1785_v17 }
 0x80f   : > { %v1786_v12 = vsel %vm1782_vm10, %v1780_v0, %v1784_v21 }
 0x810   : > { %v1789_v25 = vadd.f32 1.0, %v1787_v3  ;;  %v1788_v27 = vsub.f32 1.0, %v1786_v12 }
 0x812   : > { %v1791_v30 = vmul.f32 %v1789_v25, %v1719_v22  ;;  %v1790_v13 = vadd.f32 1.0, %v1788_v27 }
 0x814   : > { %v1792_v29 = vmul.f32 %v1790_v13, %v1720_v32 }
 0x816   : > { %v1793_v23 = vpack.c.bf16 %v1792_v29, %v1791_v30 }
 0x818   : > { %2376 = vmatmul.mubr.bf16.vlgmr.msra.gmra.mrb[12].mxu1 %v1793_v23 }
 0x8ea   : > { %1906 = sbr.rel (%p2209_p5) target bundleno = 2291 (0x8f3), region = 116 }
 0x8eb   : > { %v1892_v31 = vpop.f32.mrb[12].mxu1 }
 0x8ec   : > { %v1899_v10 = vadd.f32 %v1892_v31, %v3726_v38  ;;  %v2377_v34 = vpop.f32.mrb[13].mxu1 }
 0x8ed   : > { %v1895_v37 = vpop.f32.mrb[14].mxu1 }
 0x8ee   : > { %1901 = vst.msk [vmem:[#allocation2] sm:$0xff] %vm692_vm2, %v1899_v10  ;;  %v1900_v15 = vadd.f32 %v1895_v37, %v3729_v20  ;;  %v2378_v19 = vpop.f32.mrb[15].mxu1  ;;  %v2221_v9 = vpack.c.bf16 (!%p2209_p5), %v1899_v10, %v1899_v10 }
 0x8f0   : > { %1902 = vst.msk [vmem:[#allocation2 + $0x8] sm:$0xff] %vm692_vm2, %v1900_v15  ;;  %v2222_v11 = vpack.c.bf16 (!%p2209_p5), %v1900_v15, %v1900_v15 }
 0x8f1   : > { %1916 = vst.msk [vmem:[#allocation18] sm:$0xf] %vm1915_vm11, %v2221_v9 }
 0x8f2   : > { %1917 = vst.msk [vmem:[#allocation18 + $0x4] sm:$0xf] %vm1915_vm11, %v2222_v11 }
 0x8f3 PF: > { %s3910_s14 = sld [smem:[#allocation26_spill]]  ;;  %s3020_s30 = smov [#allocation18]  }
 0x8f4   : > { %s1924_s29 = sshll.u32 %s3020_s30, 4  ;;  %s1925_s29 = int_to_ptr.vmem [resolvable:$true] %s1924_s29 }
 0x8f5   : > { %s2923_s21 = scalar_lea.vmem %s1925_s29, 128  ;;  %p2930_p2 = scmp.lt.s32.totalorder %s1925_s29, %s1925_s29 }
 0x8f6   : > { %p2924_p7 = scmp.ne.s32.totalorder %s1925_s29, %s2923_s21  ;;  %p2931_p10 = scmp.lt.s32.totalorder %s2923_s21, %s2923_s21 }
 0x8f8   : > { %p2932_p3 = por %p2931_p10, %p2930_p2 }
 0x8f9   : > { %p2473_p9 = scmp.eq.s32.totalorder %s3910_s14, 1 }
 0x8fb   : > { %p2925_p12 = pnand %p2924_p7, %p2473_p9 }
 0x8fd   : > { %p2926_p11 = pneg %p2925_p12 }
 0x8ff   : > { %p2933_p8 = pnand %p2932_p3, %p2926_p11 }
 0x901   : > { %2936 = shalt.err (!%p2933_p8)
}
 0x902   : > { %s3911_s0 = sld [smem:[#allocation35_spill]] }
 0x908   : > { %s2937_s13 = scalar_lea.hbm %s3911_s0, 128 }
 0x909   : > { %p2938_p1 = scmp.ne.s32.totalorder %s3911_s0, %s2937_s13  ;;  %p2943_p0 = scmp.lt.u32.totalorder %s2937_s13, %s3911_s0 }
 0x90b   : > { %p2939_p4 = pnand %p2938_p1, %p2473_p9 }
 0x90d   : > { %p2940_p6 = pneg %p2939_p4 }
 0x90f   : > { %p2945_p13 = pnand %p2943_p0, %p2940_p6 }
 0x911   : > { %2948 = shalt.err (!%p2945_p13)
}
 0x912   : > { %s3021_s24 = smov 64   ;;  %s3022_s22 = smov 4  }
 0x913   : > { %2426 = dma.vmem_to_hbm [thread:$0]  (%p2473_p9), %s1925_s29, 128, %s3911_s0, [#allocation5], %s3021_s24, %s3021_s24, %s3022_s22  }
 0x914   : > { %2982 = dma.done.wait (%p2473_p9), [#allocation5], 128  }
 0x915   : > { %2984 = vsyncadd (%p2473_p9), [#allocation5], 4294967168 }
 0x916 PF: > { %s3912_s20 = sld [smem:[#allocation27_spill]]  ;;  %s3913_s17 = sld [smem:[#allocation24_spill]] }
 0x917   : > { %s3914_s18 = sld [smem:[#allocation25_spill]]  ;;  %s3915_s19 = sld [smem:[#allocation28_spill]] }
 0x91c   : > { %p22_p5 = scmp.ge.s32.totalorder %s3912_s20, 4  }
 0x91e   :  { %24 = sbr.rel (!%p22_p5) target bundleno = 11 (0xb), region = 190 }
 0x925   :  { %1940 = vsyncpa [#allocation4], 1 }
 0x926   :  { %1942 = vsyncpa [#allocation4 + $0x1], 1 }
 0x927   :  { %1943 = vsyncpa [#allocation7], 1 }
 0x928   :  { %1944 = vsyncpa [#allocation10], 1 }
 0x929   :  { %1945 = vsyncpa [#allocation5], 1 }
 0x92a   :  { %1947 = vsyncpa [#allocation5 + $0x1], 1 }

</bundles_post_ra>
